<compile_context>
chip_gen: v5e
topology: v5e:2x2
jax: 0.10.0
libtpu: 0.0.40
codegen_flags: <defaults>
</compile_context>

<pallas_src>
import jax
import jax.numpy as jnp
from jax import lax
from jax.experimental import pallas as pl
from jax.experimental.pallas import tpu as pltpu

# ---- model hyper-params (from the PyTorch script) ----
N_EMBD = 64
BLOCK_SIZE = 32
N_HEAD = 4
HEAD_SIZE = N_EMBD // N_HEAD      # 16
FF_DIM = 4 * N_EMBD               # 256
LN_EPS = 1e-5
ATT_SCALE = N_EMBD ** (-0.5)      # matches `* n_embd ** (-0.5)` in Head.forward
NEG_INF = -1e30                   # finite additive mask (softmax-safe)

# MXU operand dtype: bf16 operands + f32 accumulation (~2x MXU rate on v6e/v7x,
# half the operand VMEM/vreg traffic).  Set to jnp.float32 for strict f32 parity
# (e.g. on v5e if exact parity with the f32 reference is required).
MATMUL_DTYPE = jnp.bfloat16

# <= v7x physical VMEM (64 MiB); raise toward 128 MiB on v5e/v6e when sweeping tb.
VMEM_LIMIT_BYTES = 64 * 1024 * 1024


def _layernorm(v, gamma, beta):
    mu = jnp.mean(v, axis=-1, keepdims=True)
    var = jnp.mean((v - mu) ** 2, axis=-1, keepdims=True)
    return (v - mu) * lax.rsqrt(var + LN_EPS) * gamma + beta


def _mm(a, b):
    return jnp.dot(a.astype(MATMUL_DTYPE), b.astype(MATMUL_DTYPE),
                   preferred_element_type=jnp.float32)


def _bmm(eq, a, b):
    return jnp.einsum(eq, a.astype(MATMUL_DTYPE), b.astype(MATMUL_DTYPE),
                      preferred_element_type=jnp.float32)


def block_kernel(x_ref, ln1g_ref, ln1b_ref,
                 wqkv_ref, wproj_ref, bproj_ref,
                 ln2g_ref, ln2b_ref, w1_ref, b1_ref, w2_ref, b2_ref,
                 o_ref):
    TB, T, C = x_ref.shape
    M = TB * T

    xf = x_ref[...].reshape(M, C).astype(jnp.float32)        # flatten batch*seq

    # ---- LayerNorm 1 (all rows at once) ----
    xn = _layernorm(xf, ln1g_ref[0], ln1b_ref[0])             # (M, C)

    # ---- fused QKV projection: one (M, 64) @ (64, 192) matmul.
    # ATT_SCALE is already folded into the Q columns (done once in the wrapper).
    kqv = _mm(xn, wqkv_ref[...])                              # (M, 3C) = [K | Q | V]
    kqv3 = kqv.reshape(TB, T, 3 * C)

    # ---- causal additive bias: built & broadcast ONCE, reused by all heads ----
    row = lax.broadcasted_iota(jnp.int32, (T, T), 0)
    col = lax.broadcasted_iota(jnp.int32, (T, T), 1)
    bias = jnp.where(col <= row, 0.0, NEG_INF).astype(jnp.float32)
    bias = jnp.broadcast_to(bias, (TB, T, T))                 # hoisted out of the loop

    # ---- multi-head attention (4 heads, static unroll); softmax math in f32 ----
    heads = []
    for h in range(N_HEAD):
        lo = h * HEAD_SIZE
        kh = kqv3[:, :, lo:lo + HEAD_SIZE]                    # (TB, T, HS)
        qh = kqv3[:, :, C + lo:C + lo + HEAD_SIZE]
        vh = kqv3[:, :, 2 * C + lo:2 * C + lo + HEAD_SIZE]
        wei = _bmm('bqd,bkd->bqk', qh, kh) + bias             # (TB, T, T)
        e = jnp.exp(wei - jnp.max(wei, axis=-1, keepdims=True))
        p = e * pl.reciprocal(jnp.sum(e, axis=-1, keepdims=True), approx=True)
        heads.append(_bmm('bqk,bkd->bqd', p, vh))             # (TB, T, HS)

    # ---- ONE K=64 output projection (instead of four K=16 accumulations) ----
    att = jnp.concatenate(heads, axis=-1).reshape(M, C)       # (M, C)
    sa = _mm(att, wproj_ref[...]) + bproj_ref[0]

    x1 = xf + sa                                              # residual 1

    # ---- LayerNorm 2 + FeedForward (Linear -> ReLU -> Linear); dropout=0 ----
    xn2 = _layernorm(x1, ln2g_ref[0], ln2b_ref[0])
    hid = jnp.maximum(_mm(xn2, w1_ref[...]) + b1_ref[0], 0.0)
    ff = _mm(hid, w2_ref[...]) + b2_ref[0]

    o_ref[...] = (x1 + ff).reshape(TB, T, C).astype(o_ref.dtype)   # residual 2


def gpt_block_pallas(x, params, *, tb=None):
    B, T, C = x.shape
    assert C == N_EMBD and T <= BLOCK_SIZE

    (ln1g, ln1b, wk, wq, wv, wproj, bproj,
     ln2g, ln2b, w1, b1, w2, b2) = params

    # Pack per-head K/Q/V weights into one (C, 3C) matrix:
    # columns = [K_h0..K_h3 | Q_h0..Q_h3 | V_h0..V_h3], each head HS wide.
    # Fold the attention scale into the Q columns -> no in-kernel scale multiply.
    pack = lambda w: jnp.moveaxis(w, 0, 1).reshape(C, N_HEAD * HEAD_SIZE)
    wqkv = jnp.concatenate([pack(wk), pack(wq) * ATT_SCALE, pack(wv)], axis=1)

    # Pre-cast the big weight matrices to the MXU operand dtype once (resident in
    # VMEM across all grid steps, half the footprint); LN params/biases stay f32.
    wqkv_c = wqkv.astype(MATMUL_DTYPE)
    wproj_c = wproj.astype(MATMUL_DTYPE)
    w1_c = w1.astype(MATMUL_DTYPE)
    w2_c = w2.astype(MATMUL_DTYPE)

    # ---- batch-tile selection (sweepable) ----
    # Default 128 batch elements per step (~20 MiB live VMEM at T=32): amortizes
    # the ~0.35 us/step overhead and gives the MXU an M-dim of tb*T rows.
    # Sweep upward on v5e/v6e (128 MiB VMEM); keep <= ~256 on v7x (64 MiB).
    if tb is None:
        tb = 128
    tb = max(1, min(int(tb), B))
    if tb < B:
        tb = min(B, max(8, ((tb + 7) // 8) * 8))     # sublane-aligned multi-step tile
    grid_b = pl.cdiv(B, tb)
    if grid_b == 1 and B >= 16:
        # Keep >= 2 grid steps so both v7x TensorCores get work.
        tb = max(8, (pl.cdiv(B, 2) // 8) * 8)
        grid_b = pl.cdiv(B, tb)
    b_pad = grid_b * tb
    x_in = x if b_pad == B else jnp.pad(x, ((0, b_pad - B), (0, 0), (0, 0)))

    full = lambda shape: pl.BlockSpec(shape, lambda b: (0,) * len(shape))

    flops_per_tok = (2 * C * 3 * C      # fused QKV
                     + 4 * T * C        # attention logits + PV (all heads)
                     + 2 * C * C        # output projection
                     + 4 * C * FF_DIM)  # FFN (two matmuls)
    cost = pl.CostEstimate(
        flops=int(b_pad * T * flops_per_tok),
        transcendentals=int(b_pad * N_HEAD * T * T + 2 * b_pad * T),
        bytes_accessed=int(2 * b_pad * T * C * 4
                           + (wqkv.size + wproj.size + w1.size + w2.size) * 4),
    )

    grid_spec = pltpu.PrefetchScalarGridSpec(
        num_scalar_prefetch=0,
        grid=(grid_b,),
        in_specs=[
            pl.BlockSpec((tb, T, C), lambda b: (b, 0, 0)),     # x tile (streams)
            full((1, C)), full((1, C)),                        # ln1 gamma/beta
            full((C, 3 * C)),                                  # fused QKV weights
            full((C, C)), full((1, C)),                        # proj W, b
            full((1, C)), full((1, C)),                        # ln2 gamma/beta
            full((C, FF_DIM)), full((1, FF_DIM)),              # ffn W1, b1
            full((FF_DIM, C)), full((1, C)),                   # ffn W2, b2
        ],
        out_specs=pl.BlockSpec((tb, T, C), lambda b: (b, 0, 0)),
    )

    out = pl.pallas_call(
        block_kernel,
        out_shape=jax.ShapeDtypeStruct((b_pad, T, C), x.dtype),
        grid_spec=grid_spec,
        compiler_params=pltpu.CompilerParams(
            dimension_semantics=("parallel",),
            vmem_limit_bytes=VMEM_LIMIT_BYTES),
        cost_estimate=cost,
    )(x_in, ln1g, ln1b, wqkv_c, wproj_c, bproj, ln2g, ln2b, w1_c, b1, w2_c, b2)

    return out[:B] if b_pad != B else out


# ---------------- pure-JAX f32 reference (for verification) ----------------
def gpt_block_ref(x, params):
    (ln1g, ln1b, wk, wq, wv, wproj, bproj,
     ln2g, ln2b, w1, b1, w2, b2) = params
    B, T, C = x.shape
    xn = _layernorm(x, ln1g[0], ln1b[0])
    causal = jnp.tril(jnp.ones((T, T), bool))
    heads = []
    for h in range(N_HEAD):
        k = xn @ wk[h]
        q = xn @ wq[h]
        v = xn @ wv[h]
        wei = (q @ jnp.swapaxes(k, -1, -2)) * ATT_SCALE
        wei = jnp.where(causal, wei, -jnp.inf)
        wei = jax.nn.softmax(wei, axis=-1)
        heads.append(wei @ v)
    sa = jnp.concatenate(heads, axis=-1) @ wproj + bproj[0]
    x1 = x + sa
    xn2 = _layernorm(x1, ln2g[0], ln2b[0])
    ff = jnp.maximum(xn2 @ w1 + b1[0], 0.0) @ w2 + b2[0]
    return x1 + ff


def init_params(key):
    ks = jax.random.split(key, 8)
    s = 0.02
    wk = jax.random.normal(ks[0], (N_HEAD, N_EMBD, HEAD_SIZE), jnp.float32) * s
    wq = jax.random.normal(ks[1], (N_HEAD, N_EMBD, HEAD_SIZE), jnp.float32) * s
    wv = jax.random.normal(ks[2], (N_HEAD, N_EMBD, HEAD_SIZE), jnp.float32) * s
    wproj = jax.random.normal(ks[3], (N_EMBD, N_EMBD), jnp.float32) * s
    bproj = jax.random.normal(ks[4], (1, N_EMBD), jnp.float32) * s
    w1 = jax.random.normal(ks[5], (N_EMBD, FF_DIM), jnp.float32) * s
    b1 = jax.random.normal(ks[6], (1, FF_DIM), jnp.float32) * s
    w2 = jax.random.normal(ks[7], (FF_DIM, N_EMBD), jnp.float32) * s
    b2 = jnp.zeros((1, N_EMBD), jnp.float32)
    ln1g = jnp.ones((1, N_EMBD), jnp.float32)
    ln1b = jnp.zeros((1, N_EMBD), jnp.float32)
    ln2g = jnp.ones((1, N_EMBD), jnp.float32)
    ln2b = jnp.zeros((1, N_EMBD), jnp.float32)
    return (ln1g, ln1b, wk, wq, wv, wproj, bproj,
            ln2g, ln2b, w1, b1, w2, b2)


if __name__ == "__main__":
    key = jax.random.PRNGKey(0)
    k_x, k_x2, k_p = jax.random.split(key, 3)
    params = init_params(k_p)

    # Tolerance: bf16 MXU operands (f32 accumulation / softmax / LN / residuals).
    TOL = 2e-2

    # 1) Small demo shape (single grid step, tb = B).
    B, T = 2, 8                                  # T <= block_size (32)
    x = jax.random.normal(k_x, (B, T, N_EMBD), jnp.float32)
    out = jax.block_until_ready(gpt_block_pallas(x, params))
    ref = gpt_block_ref(x, params)
    assert out.shape == (B, T, N_EMBD)
    err = float(jnp.max(jnp.abs(out - ref)))
    assert err < TOL, f"max err {err}"

    # 2) Multi-step batched grid + batch-padding path (B=12, tb=8 -> grid=(2,)).
    B2, T2 = 12, BLOCK_SIZE
    x2 = jax.random.normal(k_x2, (B2, T2, N_EMBD), jnp.float32)
    out2 = jax.block_until_ready(gpt_block_pallas(x2, params, tb=8))
    ref2 = gpt_block_ref(x2, params)
    assert out2.shape == (B2, T2, N_EMBD)
    err2 = float(jnp.max(jnp.abs(out2 - ref2)))
    assert err2 < TOL, f"max err {err2}"

    print("KERNEL_OK")
</pallas_src>

<mosaic_0001>
module attributes {stable_mosaic.version = 11 : i64} {
  func.func @block_kernel(%arg0: i32, %arg1: memref<2x8x64xf32, #tpu.memory_space<vmem>>, %arg2: memref<1x64xf32, #tpu.memory_space<vmem>>, %arg3: memref<1x64xf32, #tpu.memory_space<vmem>>, %arg4: memref<64x192xbf16, #tpu.memory_space<vmem>>, %arg5: memref<64x64xbf16, #tpu.memory_space<vmem>>, %arg6: memref<1x64xf32, #tpu.memory_space<vmem>>, %arg7: memref<1x64xf32, #tpu.memory_space<vmem>>, %arg8: memref<1x64xf32, #tpu.memory_space<vmem>>, %arg9: memref<64x256xbf16, #tpu.memory_space<vmem>>, %arg10: memref<1x256xf32, #tpu.memory_space<vmem>>, %arg11: memref<256x64xbf16, #tpu.memory_space<vmem>>, %arg12: memref<1x64xf32, #tpu.memory_space<vmem>>, %arg13: memref<2x8x64xf32, #tpu.memory_space<vmem>>) attributes {dimension_semantics = [#tpu.dimension_semantics<parallel>], iteration_bounds = array<i64: 1>, scalar_prefetch = 0 : i64, scratch_operands = 0 : i64, tpu.core_type = #tpu.core_type<tc>, window_params = [{transform_indices = @transform_0, window_bounds = array<i64: 2, 8, 64>}, {pipeline_mode = #tpu.pipeline_mode<synchronous>, transform_indices = @transform_1, window_bounds = array<i64: 1, 64>}, {pipeline_mode = #tpu.pipeline_mode<synchronous>, transform_indices = @transform_2, window_bounds = array<i64: 1, 64>}, {pipeline_mode = #tpu.pipeline_mode<synchronous>, transform_indices = @transform_3, window_bounds = array<i64: 64, 192>}, {pipeline_mode = #tpu.pipeline_mode<synchronous>, transform_indices = @transform_4, window_bounds = array<i64: 64, 64>}, {pipeline_mode = #tpu.pipeline_mode<synchronous>, transform_indices = @transform_5, window_bounds = array<i64: 1, 64>}, {pipeline_mode = #tpu.pipeline_mode<synchronous>, transform_indices = @transform_6, window_bounds = array<i64: 1, 64>}, {pipeline_mode = #tpu.pipeline_mode<synchronous>, transform_indices = @transform_7, window_bounds = array<i64: 1, 64>}, {pipeline_mode = #tpu.pipeline_mode<synchronous>, transform_indices = @transform_8, window_bounds = array<i64: 64, 256>}, {pipeline_mode = #tpu.pipeline_mode<synchronous>, transform_indices = @transform_9, window_bounds = array<i64: 1, 256>}, {pipeline_mode = #tpu.pipeline_mode<synchronous>, transform_indices = @transform_10, window_bounds = array<i64: 256, 64>}, {pipeline_mode = #tpu.pipeline_mode<synchronous>, transform_indices = @transform_11, window_bounds = array<i64: 1, 64>}, {transform_indices = @transform_12, window_bounds = array<i64: 2, 8, 64>}]} {
    %c0 = arith.constant 0 : index
    %c0_0 = arith.constant 0 : index
    %c0_1 = arith.constant 0 : index
    %0 = vector.load %arg1[%c0, %c0_0, %c0_1] : memref<2x8x64xf32, #tpu.memory_space<vmem>>, vector<2x8x64xf32>
    %1 = vector.shape_cast %0 : vector<2x8x64xf32> to vector<16x64xf32>
    %c0_2 = arith.constant 0 : index
    %c0_3 = arith.constant 0 : index
    %2 = vector.load %arg2[%c0_2, %c0_3] : memref<1x64xf32, #tpu.memory_space<vmem>>, vector<1x64xf32>
    %3 = vector.shape_cast %2 : vector<1x64xf32> to vector<64xf32>
    %c0_4 = arith.constant 0 : index
    %c0_5 = arith.constant 0 : index
    %4 = vector.load %arg3[%c0_4, %c0_5] : memref<1x64xf32, #tpu.memory_space<vmem>>, vector<1x64xf32>
    %5 = vector.shape_cast %4 : vector<1x64xf32> to vector<64xf32>
    %cst = arith.constant dense<0.000000e+00> : vector<16xf32>
    %6 = vector.multi_reduction <add>, %1, %cst [1] : vector<16x64xf32> to vector<16xf32>
    %7 = vector.shape_cast %6 : vector<16xf32> to vector<16x1xf32>
    %cst_6 = arith.constant 6.400000e+01 : f32
    %8 = vector.broadcast %cst_6 : f32 to vector<16x1xf32>
    %9 = arith.divf %7, %8 : vector<16x1xf32>
    %10 = vector.broadcast %9 : vector<16x1xf32> to vector<16x64xf32>
    %11 = arith.subf %1, %10 : vector<16x64xf32>
    %12 = arith.mulf %11, %11 : vector<16x64xf32>
    %cst_7 = arith.constant dense<0.000000e+00> : vector<16xf32>
    %13 = vector.multi_reduction <add>, %12, %cst_7 [1] : vector<16x64xf32> to vector<16xf32>
    %14 = vector.shape_cast %13 : vector<16xf32> to vector<16x1xf32>
    %cst_8 = arith.constant 6.400000e+01 : f32
    %15 = vector.broadcast %cst_8 : f32 to vector<16x1xf32>
    %16 = arith.divf %14, %15 : vector<16x1xf32>
    %17 = vector.broadcast %9 : vector<16x1xf32> to vector<16x64xf32>
    %18 = arith.subf %1, %17 : vector<16x64xf32>
    %cst_9 = arith.constant 9.99999974E-6 : f32
    %19 = vector.broadcast %cst_9 : f32 to vector<16x1xf32>
    %20 = arith.addf %16, %19 : vector<16x1xf32>
    %21 = math.rsqrt %20 : vector<16x1xf32>
    %22 = vector.broadcast %21 : vector<16x1xf32> to vector<16x64xf32>
    %23 = arith.mulf %18, %22 : vector<16x64xf32>
    %24 = vector.shape_cast %3 : vector<64xf32> to vector<1x64xf32>
    %25 = vector.broadcast %24 : vector<1x64xf32> to vector<16x64xf32>
    %26 = arith.mulf %23, %25 : vector<16x64xf32>
    %27 = vector.shape_cast %5 : vector<64xf32> to vector<1x64xf32>
    %28 = vector.broadcast %27 : vector<1x64xf32> to vector<16x64xf32>
    %29 = arith.addf %26, %28 : vector<16x64xf32>
    %c0_10 = arith.constant 0 : index
    %c0_11 = arith.constant 0 : index
    %30 = vector.load %arg4[%c0_10, %c0_11] : memref<64x192xbf16, #tpu.memory_space<vmem>>, vector<64x192xbf16>
    %31 = arith.truncf %29 : vector<16x64xf32> to vector<16x64xbf16>
    %cst_12 = arith.constant dense<0.000000e+00> : vector<16x192xf32>
    %32 = tpu.matmul %31, %30, %cst_12 {dimension_numbers = #tpu.dot_dimension_numbers<[1], [0], [0], [1], [0, 0, 1, 1], [], []>} : vector<16x64xbf16>, vector<64x192xbf16>, vector<16x192xf32> -> vector<16x192xf32>
    %33 = vector.shape_cast %32 : vector<16x192xf32> to vector<2x8x192xf32>
    %34 = tpu.iota {dimensions = array<i32: 0>} : vector<8x8xi32>
    %35 = tpu.iota {dimensions = array<i32: 1>} : vector<8x8xi32>
    %36 = arith.cmpi sle, %35, %34 : vector<8x8xi32>
    %cst_13 = arith.constant 0.000000e+00 : f32
    %cst_14 = arith.constant -1.000000e+30 : f32
    %37 = vector.broadcast %cst_13 : f32 to vector<8x8xf32>
    %38 = vector.broadcast %cst_14 : f32 to vector<8x8xf32>
    %39 = arith.select %36, %37, %38 : vector<8x8xi1>, vector<8x8xf32>
    %40 = vector.shape_cast %39 : vector<8x8xf32> to vector<1x8x8xf32>
    %41 = vector.broadcast %40 : vector<1x8x8xf32> to vector<2x8x8xf32>
    %42 = vector.extract_strided_slice %33 {offsets = [0, 0, 0], sizes = [2, 8, 16], strides = [1, 1, 1]} : vector<2x8x192xf32> to vector<2x8x16xf32>
    %43 = vector.extract_strided_slice %33 {offsets = [0, 0, 64], sizes = [2, 8, 16], strides = [1, 1, 1]} : vector<2x8x192xf32> to vector<2x8x16xf32>
    %44 = vector.extract_strided_slice %33 {offsets = [0, 0, 128], sizes = [2, 8, 16], strides = [1, 1, 1]} : vector<2x8x192xf32> to vector<2x8x16xf32>
    %45 = arith.truncf %43 : vector<2x8x16xf32> to vector<2x8x16xbf16>
    %46 = arith.truncf %42 : vector<2x8x16xf32> to vector<2x8x16xbf16>
    "tpu.trace_start"() <{level = 10 : i32, message = "bqd,bkd->bqk"}> : () -> ()
    %cst_15 = arith.constant dense<0.000000e+00> : vector<2x8x8xf32>
    %47 = tpu.matmul %45, %46, %cst_15 {dimension_numbers = #tpu.dot_dimension_numbers<[2], [2], [1], [1], [0, 0, 0, 1, 1, 1], [0], [0]>} : vector<2x8x16xbf16>, vector<2x8x16xbf16>, vector<2x8x8xf32> -> vector<2x8x8xf32>
    "tpu.trace_stop"() : () -> ()
    %48 = arith.addf %47, %41 : vector<2x8x8xf32>
    %cst_16 = arith.constant dense<0xFF800000> : vector<2x8xf32>
    %49 = vector.multi_reduction <maximumf>, %48, %cst_16 [2] : vector<2x8x8xf32> to vector<2x8xf32>
    %50 = vector.shape_cast %49 : vector<2x8xf32> to vector<2x8x1xf32>
    %51 = vector.broadcast %50 : vector<2x8x1xf32> to vector<2x8x8xf32>
    %52 = arith.subf %48, %51 : vector<2x8x8xf32>
    %53 = math.exp %52 : vector<2x8x8xf32>
    %cst_17 = arith.constant dense<0.000000e+00> : vector<2x8xf32>
    %54 = vector.multi_reduction <add>, %53, %cst_17 [2] : vector<2x8x8xf32> to vector<2x8xf32>
    %55 = vector.shape_cast %54 : vector<2x8xf32> to vector<2x8x1xf32>
    %56 = tpu.reciprocal %55 {approx = true} : vector<2x8x1xf32> -> vector<2x8x1xf32>
    %57 = vector.broadcast %56 : vector<2x8x1xf32> to vector<2x8x8xf32>
    %58 = arith.mulf %53, %57 : vector<2x8x8xf32>
    %59 = arith.truncf %58 : vector<2x8x8xf32> to vector<2x8x8xbf16>
    %60 = arith.truncf %44 : vector<2x8x16xf32> to vector<2x8x16xbf16>
    "tpu.trace_start"() <{level = 10 : i32, message = "bqk,bkd->bqd"}> : () -> ()
    %cst_18 = arith.constant dense<0.000000e+00> : vector<2x8x16xf32>
    %61 = tpu.matmul %59, %60, %cst_18 {dimension_numbers = #tpu.dot_dimension_numbers<[2], [1], [1], [2], [0, 0, 0, 1, 1, 2], [0], [0]>} : vector<2x8x8xbf16>, vector<2x8x16xbf16>, vector<2x8x16xf32> -> vector<2x8x16xf32>
    "tpu.trace_stop"() : () -> ()
    %62 = vector.extract_strided_slice %33 {offsets = [0, 0, 16], sizes = [2, 8, 16], strides = [1, 1, 1]} : vector<2x8x192xf32> to vector<2x8x16xf32>
    %63 = vector.extract_strided_slice %33 {offsets = [0, 0, 80], sizes = [2, 8, 16], strides = [1, 1, 1]} : vector<2x8x192xf32> to vector<2x8x16xf32>
    %64 = vector.extract_strided_slice %33 {offsets = [0, 0, 144], sizes = [2, 8, 16], strides = [1, 1, 1]} : vector<2x8x192xf32> to vector<2x8x16xf32>
    %65 = arith.truncf %63 : vector<2x8x16xf32> to vector<2x8x16xbf16>
    %66 = arith.truncf %62 : vector<2x8x16xf32> to vector<2x8x16xbf16>
    "tpu.trace_start"() <{level = 10 : i32, message = "bqd,bkd->bqk"}> : () -> ()
    %cst_19 = arith.constant dense<0.000000e+00> : vector<2x8x8xf32>
    %67 = tpu.matmul %65, %66, %cst_19 {dimension_numbers = #tpu.dot_dimension_numbers<[2], [2], [1], [1], [0, 0, 0, 1, 1, 1], [0], [0]>} : vector<2x8x16xbf16>, vector<2x8x16xbf16>, vector<2x8x8xf32> -> vector<2x8x8xf32>
    "tpu.trace_stop"() : () -> ()
    %68 = arith.addf %67, %41 : vector<2x8x8xf32>
    %cst_20 = arith.constant dense<0xFF800000> : vector<2x8xf32>
    %69 = vector.multi_reduction <maximumf>, %68, %cst_20 [2] : vector<2x8x8xf32> to vector<2x8xf32>
    %70 = vector.shape_cast %69 : vector<2x8xf32> to vector<2x8x1xf32>
    %71 = vector.broadcast %70 : vector<2x8x1xf32> to vector<2x8x8xf32>
    %72 = arith.subf %68, %71 : vector<2x8x8xf32>
    %73 = math.exp %72 : vector<2x8x8xf32>
    %cst_21 = arith.constant dense<0.000000e+00> : vector<2x8xf32>
    %74 = vector.multi_reduction <add>, %73, %cst_21 [2] : vector<2x8x8xf32> to vector<2x8xf32>
    %75 = vector.shape_cast %74 : vector<2x8xf32> to vector<2x8x1xf32>
    %76 = tpu.reciprocal %75 {approx = true} : vector<2x8x1xf32> -> vector<2x8x1xf32>
    %77 = vector.broadcast %76 : vector<2x8x1xf32> to vector<2x8x8xf32>
    %78 = arith.mulf %73, %77 : vector<2x8x8xf32>
    %79 = arith.truncf %78 : vector<2x8x8xf32> to vector<2x8x8xbf16>
    %80 = arith.truncf %64 : vector<2x8x16xf32> to vector<2x8x16xbf16>
    "tpu.trace_start"() <{level = 10 : i32, message = "bqk,bkd->bqd"}> : () -> ()
    %cst_22 = arith.constant dense<0.000000e+00> : vector<2x8x16xf32>
    %81 = tpu.matmul %79, %80, %cst_22 {dimension_numbers = #tpu.dot_dimension_numbers<[2], [1], [1], [2], [0, 0, 0, 1, 1, 2], [0], [0]>} : vector<2x8x8xbf16>, vector<2x8x16xbf16>, vector<2x8x16xf32> -> vector<2x8x16xf32>
    "tpu.trace_stop"() : () -> ()
    %82 = vector.extract_strided_slice %33 {offsets = [0, 0, 32], sizes = [2, 8, 16], strides = [1, 1, 1]} : vector<2x8x192xf32> to vector<2x8x16xf32>
    %83 = vector.extract_strided_slice %33 {offsets = [0, 0, 96], sizes = [2, 8, 16], strides = [1, 1, 1]} : vector<2x8x192xf32> to vector<2x8x16xf32>
    %84 = vector.extract_strided_slice %33 {offsets = [0, 0, 160], sizes = [2, 8, 16], strides = [1, 1, 1]} : vector<2x8x192xf32> to vector<2x8x16xf32>
    %85 = arith.truncf %83 : vector<2x8x16xf32> to vector<2x8x16xbf16>
    %86 = arith.truncf %82 : vector<2x8x16xf32> to vector<2x8x16xbf16>
    "tpu.trace_start"() <{level = 10 : i32, message = "bqd,bkd->bqk"}> : () -> ()
    %cst_23 = arith.constant dense<0.000000e+00> : vector<2x8x8xf32>
    %87 = tpu.matmul %85, %86, %cst_23 {dimension_numbers = #tpu.dot_dimension_numbers<[2], [2], [1], [1], [0, 0, 0, 1, 1, 1], [0], [0]>} : vector<2x8x16xbf16>, vector<2x8x16xbf16>, vector<2x8x8xf32> -> vector<2x8x8xf32>
    "tpu.trace_stop"() : () -> ()
    %88 = arith.addf %87, %41 : vector<2x8x8xf32>
    %cst_24 = arith.constant dense<0xFF800000> : vector<2x8xf32>
    %89 = vector.multi_reduction <maximumf>, %88, %cst_24 [2] : vector<2x8x8xf32> to vector<2x8xf32>
    %90 = vector.shape_cast %89 : vector<2x8xf32> to vector<2x8x1xf32>
    %91 = vector.broadcast %90 : vector<2x8x1xf32> to vector<2x8x8xf32>
    %92 = arith.subf %88, %91 : vector<2x8x8xf32>
    %93 = math.exp %92 : vector<2x8x8xf32>
    %cst_25 = arith.constant dense<0.000000e+00> : vector<2x8xf32>
    %94 = vector.multi_reduction <add>, %93, %cst_25 [2] : vector<2x8x8xf32> to vector<2x8xf32>
    %95 = vector.shape_cast %94 : vector<2x8xf32> to vector<2x8x1xf32>
    %96 = tpu.reciprocal %95 {approx = true} : vector<2x8x1xf32> -> vector<2x8x1xf32>
    %97 = vector.broadcast %96 : vector<2x8x1xf32> to vector<2x8x8xf32>
    %98 = arith.mulf %93, %97 : vector<2x8x8xf32>
    %99 = arith.truncf %98 : vector<2x8x8xf32> to vector<2x8x8xbf16>
    %100 = arith.truncf %84 : vector<2x8x16xf32> to vector<2x8x16xbf16>
    "tpu.trace_start"() <{level = 10 : i32, message = "bqk,bkd->bqd"}> : () -> ()
    %cst_26 = arith.constant dense<0.000000e+00> : vector<2x8x16xf32>
    %101 = tpu.matmul %99, %100, %cst_26 {dimension_numbers = #tpu.dot_dimension_numbers<[2], [1], [1], [2], [0, 0, 0, 1, 1, 2], [0], [0]>} : vector<2x8x8xbf16>, vector<2x8x16xbf16>, vector<2x8x16xf32> -> vector<2x8x16xf32>
    "tpu.trace_stop"() : () -> ()
    %102 = vector.extract_strided_slice %33 {offsets = [0, 0, 48], sizes = [2, 8, 16], strides = [1, 1, 1]} : vector<2x8x192xf32> to vector<2x8x16xf32>
    %103 = vector.extract_strided_slice %33 {offsets = [0, 0, 112], sizes = [2, 8, 16], strides = [1, 1, 1]} : vector<2x8x192xf32> to vector<2x8x16xf32>
    %104 = vector.extract_strided_slice %33 {offsets = [0, 0, 176], sizes = [2, 8, 16], strides = [1, 1, 1]} : vector<2x8x192xf32> to vector<2x8x16xf32>
    %105 = arith.truncf %103 : vector<2x8x16xf32> to vector<2x8x16xbf16>
    %106 = arith.truncf %102 : vector<2x8x16xf32> to vector<2x8x16xbf16>
    "tpu.trace_start"() <{level = 10 : i32, message = "bqd,bkd->bqk"}> : () -> ()
    %cst_27 = arith.constant dense<0.000000e+00> : vector<2x8x8xf32>
    %107 = tpu.matmul %105, %106, %cst_27 {dimension_numbers = #tpu.dot_dimension_numbers<[2], [2], [1], [1], [0, 0, 0, 1, 1, 1], [0], [0]>} : vector<2x8x16xbf16>, vector<2x8x16xbf16>, vector<2x8x8xf32> -> vector<2x8x8xf32>
    "tpu.trace_stop"() : () -> ()
    %108 = arith.addf %107, %41 : vector<2x8x8xf32>
    %cst_28 = arith.constant dense<0xFF800000> : vector<2x8xf32>
    %109 = vector.multi_reduction <maximumf>, %108, %cst_28 [2] : vector<2x8x8xf32> to vector<2x8xf32>
    %110 = vector.shape_cast %109 : vector<2x8xf32> to vector<2x8x1xf32>
    %111 = vector.broadcast %110 : vector<2x8x1xf32> to vector<2x8x8xf32>
    %112 = arith.subf %108, %111 : vector<2x8x8xf32>
    %113 = math.exp %112 : vector<2x8x8xf32>
    %cst_29 = arith.constant dense<0.000000e+00> : vector<2x8xf32>
    %114 = vector.multi_reduction <add>, %113, %cst_29 [2] : vector<2x8x8xf32> to vector<2x8xf32>
    %115 = vector.shape_cast %114 : vector<2x8xf32> to vector<2x8x1xf32>
    %116 = tpu.reciprocal %115 {approx = true} : vector<2x8x1xf32> -> vector<2x8x1xf32>
    %117 = vector.broadcast %116 : vector<2x8x1xf32> to vector<2x8x8xf32>
    %118 = arith.mulf %113, %117 : vector<2x8x8xf32>
    %119 = arith.truncf %118 : vector<2x8x8xf32> to vector<2x8x8xbf16>
    %120 = arith.truncf %104 : vector<2x8x16xf32> to vector<2x8x16xbf16>
    "tpu.trace_start"() <{level = 10 : i32, message = "bqk,bkd->bqd"}> : () -> ()
    %cst_30 = arith.constant dense<0.000000e+00> : vector<2x8x16xf32>
    %121 = tpu.matmul %119, %120, %cst_30 {dimension_numbers = #tpu.dot_dimension_numbers<[2], [1], [1], [2], [0, 0, 0, 1, 1, 2], [0], [0]>} : vector<2x8x8xbf16>, vector<2x8x16xbf16>, vector<2x8x16xf32> -> vector<2x8x16xf32>
    "tpu.trace_stop"() : () -> ()
    %122 = tpu.concatenate %61, %81, %101, %121 in 2 : vector<2x8x16xf32>, vector<2x8x16xf32>, vector<2x8x16xf32>, vector<2x8x16xf32> -> vector<2x8x64xf32>
    %123 = vector.shape_cast %122 : vector<2x8x64xf32> to vector<16x64xf32>
    %c0_31 = arith.constant 0 : index
    %c0_32 = arith.constant 0 : index
    %124 = vector.load %arg5[%c0_31, %c0_32] : memref<64x64xbf16, #tpu.memory_space<vmem>>, vector<64x64xbf16>
    %125 = arith.truncf %123 : vector<16x64xf32> to vector<16x64xbf16>
    %cst_33 = arith.constant dense<0.000000e+00> : vector<16x64xf32>
    %126 = tpu.matmul %125, %124, %cst_33 {dimension_numbers = #tpu.dot_dimension_numbers<[1], [0], [0], [1], [0, 0, 1, 1], [], []>} : vector<16x64xbf16>, vector<64x64xbf16>, vector<16x64xf32> -> vector<16x64xf32>
    %c0_34 = arith.constant 0 : index
    %c0_35 = arith.constant 0 : index
    %127 = vector.load %arg6[%c0_34, %c0_35] : memref<1x64xf32, #tpu.memory_space<vmem>>, vector<1x64xf32>
    %128 = vector.shape_cast %127 : vector<1x64xf32> to vector<64xf32>
    %129 = vector.shape_cast %128 : vector<64xf32> to vector<1x64xf32>
    %130 = vector.broadcast %129 : vector<1x64xf32> to vector<16x64xf32>
    %131 = arith.addf %126, %130 : vector<16x64xf32>
    %132 = arith.addf %1, %131 : vector<16x64xf32>
    %c0_36 = arith.constant 0 : index
    %c0_37 = arith.constant 0 : index
    %133 = vector.load %arg7[%c0_36, %c0_37] : memref<1x64xf32, #tpu.memory_space<vmem>>, vector<1x64xf32>
    %134 = vector.shape_cast %133 : vector<1x64xf32> to vector<64xf32>
    %c0_38 = arith.constant 0 : index
    %c0_39 = arith.constant 0 : index
    %135 = vector.load %arg8[%c0_38, %c0_39] : memref<1x64xf32, #tpu.memory_space<vmem>>, vector<1x64xf32>
    %136 = vector.shape_cast %135 : vector<1x64xf32> to vector<64xf32>
    %cst_40 = arith.constant dense<0.000000e+00> : vector<16xf32>
    %137 = vector.multi_reduction <add>, %132, %cst_40 [1] : vector<16x64xf32> to vector<16xf32>
    %138 = vector.shape_cast %137 : vector<16xf32> to vector<16x1xf32>
    %cst_41 = arith.constant 6.400000e+01 : f32
    %139 = vector.broadcast %cst_41 : f32 to vector<16x1xf32>
    %140 = arith.divf %138, %139 : vector<16x1xf32>
    %141 = vector.broadcast %140 : vector<16x1xf32> to vector<16x64xf32>
    %142 = arith.subf %132, %141 : vector<16x64xf32>
    %143 = arith.mulf %142, %142 : vector<16x64xf32>
    %cst_42 = arith.constant dense<0.000000e+00> : vector<16xf32>
    %144 = vector.multi_reduction <add>, %143, %cst_42 [1] : vector<16x64xf32> to vector<16xf32>
    %145 = vector.shape_cast %144 : vector<16xf32> to vector<16x1xf32>
    %cst_43 = arith.constant 6.400000e+01 : f32
    %146 = vector.broadcast %cst_43 : f32 to vector<16x1xf32>
    %147 = arith.divf %145, %146 : vector<16x1xf32>
    %148 = vector.broadcast %140 : vector<16x1xf32> to vector<16x64xf32>
    %149 = arith.subf %132, %148 : vector<16x64xf32>
    %cst_44 = arith.constant 9.99999974E-6 : f32
    %150 = vector.broadcast %cst_44 : f32 to vector<16x1xf32>
    %151 = arith.addf %147, %150 : vector<16x1xf32>
    %152 = math.rsqrt %151 : vector<16x1xf32>
    %153 = vector.broadcast %152 : vector<16x1xf32> to vector<16x64xf32>
    %154 = arith.mulf %149, %153 : vector<16x64xf32>
    %155 = vector.shape_cast %134 : vector<64xf32> to vector<1x64xf32>
    %156 = vector.broadcast %155 : vector<1x64xf32> to vector<16x64xf32>
    %157 = arith.mulf %154, %156 : vector<16x64xf32>
    %158 = vector.shape_cast %136 : vector<64xf32> to vector<1x64xf32>
    %159 = vector.broadcast %158 : vector<1x64xf32> to vector<16x64xf32>
    %160 = arith.addf %157, %159 : vector<16x64xf32>
    %c0_45 = arith.constant 0 : index
    %c0_46 = arith.constant 0 : index
    %161 = vector.load %arg9[%c0_45, %c0_46] : memref<64x256xbf16, #tpu.memory_space<vmem>>, vector<64x256xbf16>
    %162 = arith.truncf %160 : vector<16x64xf32> to vector<16x64xbf16>
    %cst_47 = arith.constant dense<0.000000e+00> : vector<16x256xf32>
    %163 = tpu.matmul %162, %161, %cst_47 {dimension_numbers = #tpu.dot_dimension_numbers<[1], [0], [0], [1], [0, 0, 1, 1], [], []>} : vector<16x64xbf16>, vector<64x256xbf16>, vector<16x256xf32> -> vector<16x256xf32>
    %c0_48 = arith.constant 0 : index
    %c0_49 = arith.constant 0 : index
    %164 = vector.load %arg10[%c0_48, %c0_49] : memref<1x256xf32, #tpu.memory_space<vmem>>, vector<1x256xf32>
    %165 = vector.shape_cast %164 : vector<1x256xf32> to vector<256xf32>
    %166 = vector.shape_cast %165 : vector<256xf32> to vector<1x256xf32>
    %167 = vector.broadcast %166 : vector<1x256xf32> to vector<16x256xf32>
    %168 = arith.addf %163, %167 : vector<16x256xf32>
    %cst_50 = arith.constant 0.000000e+00 : f32
    %169 = vector.broadcast %cst_50 : f32 to vector<16x256xf32>
    %170 = arith.maximumf %168, %169 : vector<16x256xf32>
    %c0_51 = arith.constant 0 : index
    %c0_52 = arith.constant 0 : index
    %171 = vector.load %arg11[%c0_51, %c0_52] : memref<256x64xbf16, #tpu.memory_space<vmem>>, vector<256x64xbf16>
    %172 = arith.truncf %170 : vector<16x256xf32> to vector<16x256xbf16>
    %cst_53 = arith.constant dense<0.000000e+00> : vector<16x64xf32>
    %173 = tpu.matmul %172, %171, %cst_53 {dimension_numbers = #tpu.dot_dimension_numbers<[1], [0], [0], [1], [0, 0, 1, 1], [], []>} : vector<16x256xbf16>, vector<256x64xbf16>, vector<16x64xf32> -> vector<16x64xf32>
    %c0_54 = arith.constant 0 : index
    %c0_55 = arith.constant 0 : index
    %174 = vector.load %arg12[%c0_54, %c0_55] : memref<1x64xf32, #tpu.memory_space<vmem>>, vector<1x64xf32>
    %175 = vector.shape_cast %174 : vector<1x64xf32> to vector<64xf32>
    %176 = vector.shape_cast %175 : vector<64xf32> to vector<1x64xf32>
    %177 = vector.broadcast %176 : vector<1x64xf32> to vector<16x64xf32>
    %178 = arith.addf %173, %177 : vector<16x64xf32>
    %179 = arith.addf %132, %178 : vector<16x64xf32>
    %180 = vector.shape_cast %179 : vector<16x64xf32> to vector<2x8x64xf32>
    %c0_56 = arith.constant 0 : index
    %c0_57 = arith.constant 0 : index
    %c0_58 = arith.constant 0 : index
    %181 = vector.load %arg13[%c0_56, %c0_57, %c0_58] : memref<2x8x64xf32, #tpu.memory_space<vmem>>, vector<2x8x64xf32>
    tpu.vector_store %arg13[%c0_56, %c0_57, %c0_58], %180 {strides = array<i32>} : memref<2x8x64xf32, #tpu.memory_space<vmem>>, vector<2x8x64xf32>,
    return
  }
  func.func @transform_0(%arg0: i32) -> (i32, i32, i32) {
    %c0_i32 = arith.constant 0 : i32
    %c0_i32_0 = arith.constant 0 : i32
    %c0_i32_1 = arith.constant 0 : i32
    return %arg0, %c0_i32, %c0_i32_0 : i32, i32, i32
  }
  func.func @transform_1(%arg0: i32) -> (i32, i32) {
    %c0_i32 = arith.constant 0 : i32
    %c0_i32_0 = arith.constant 0 : i32
    %c0_i32_1 = arith.constant 0 : i32
    return %c0_i32, %c0_i32_0 : i32, i32
  }
  func.func @transform_2(%arg0: i32) -> (i32, i32) {
    %c0_i32 = arith.constant 0 : i32
    %c0_i32_0 = arith.constant 0 : i32
    %c0_i32_1 = arith.constant 0 : i32
    return %c0_i32, %c0_i32_0 : i32, i32
  }
  func.func @transform_3(%arg0: i32) -> (i32, i32) {
    %c0_i32 = arith.constant 0 : i32
    %c0_i32_0 = arith.constant 0 : i32
    %c0_i32_1 = arith.constant 0 : i32
    return %c0_i32, %c0_i32_0 : i32, i32
  }
  func.func @transform_4(%arg0: i32) -> (i32, i32) {
    %c0_i32 = arith.constant 0 : i32
    %c0_i32_0 = arith.constant 0 : i32
    %c0_i32_1 = arith.constant 0 : i32
    return %c0_i32, %c0_i32_0 : i32, i32
  }
  func.func @transform_5(%arg0: i32) -> (i32, i32) {
    %c0_i32 = arith.constant 0 : i32
    %c0_i32_0 = arith.constant 0 : i32
    %c0_i32_1 = arith.constant 0 : i32
    return %c0_i32, %c0_i32_0 : i32, i32
  }
  func.func @transform_6(%arg0: i32) -> (i32, i32) {
    %c0_i32 = arith.constant 0 : i32
    %c0_i32_0 = arith.constant 0 : i32
    %c0_i32_1 = arith.constant 0 : i32
    return %c0_i32, %c0_i32_0 : i32, i32
  }
  func.func @transform_7(%arg0: i32) -> (i32, i32) {
    %c0_i32 = arith.constant 0 : i32
    %c0_i32_0 = arith.constant 0 : i32
    %c0_i32_1 = arith.constant 0 : i32
    return %c0_i32, %c0_i32_0 : i32, i32
  }
  func.func @transform_8(%arg0: i32) -> (i32, i32) {
    %c0_i32 = arith.constant 0 : i32
    %c0_i32_0 = arith.constant 0 : i32
    %c0_i32_1 = arith.constant 0 : i32
    return %c0_i32, %c0_i32_0 : i32, i32
  }
  func.func @transform_9(%arg0: i32) -> (i32, i32) {
    %c0_i32 = arith.constant 0 : i32
    %c0_i32_0 = arith.constant 0 : i32
    %c0_i32_1 = arith.constant 0 : i32
    return %c0_i32, %c0_i32_0 : i32, i32
  }
  func.func @transform_10(%arg0: i32) -> (i32, i32) {
    %c0_i32 = arith.constant 0 : i32
    %c0_i32_0 = arith.constant 0 : i32
    %c0_i32_1 = arith.constant 0 : i32
    return %c0_i32, %c0_i32_0 : i32, i32
  }
  func.func @transform_11(%arg0: i32) -> (i32, i32) {
    %c0_i32 = arith.constant 0 : i32
    %c0_i32_0 = arith.constant 0 : i32
    %c0_i32_1 = arith.constant 0 : i32
    return %c0_i32, %c0_i32_0 : i32, i32
  }
  func.func @transform_12(%arg0: i32) -> (i32, i32, i32) {
    %c0_i32 = arith.constant 0 : i32
    %c0_i32_0 = arith.constant 0 : i32
    %c0_i32_1 = arith.constant 0 : i32
    return %arg0, %c0_i32, %c0_i32_0 : i32, i32, i32
  }
}

</mosaic_0001>

<bundles_post_ra>
// kernel: tpu_custom_call.1
= control target key start
LH: loop header
LB: loop body
LE: loop exit
PB: predicated region body
PF: predicated region fallthrough
CT: control target
= control target key end

     0   :  { %vm47_vm0 = vcmask 523264   ;;  %s1822_s0 = inlined_call_operand.vmem [shape: f32[2,8,64], index: 0, kind: input, shape index: {}]   ;;  %s1823_s1 = inlined_call_operand.vmem [shape: f32[1,64], index: 1, kind: input, shape index: {}]   ;;  %s1824_s2 = inlined_call_operand.vmem [shape: f32[1,64], index: 2, kind: input, shape index: {}]   ;;  %s1825_s3 = inlined_call_operand.vmem [shape: bf16[64,192], index: 3, kind: input, shape index: {}]   ;;  %s1826_s4 = inlined_call_operand.vmem [shape: bf16[64,64], index: 4, kind: input, shape index: {}]   ;;  %s1827_s5 = inlined_call_operand.vmem [shape: f32[1,64], index: 5, kind: input, shape index: {}]   ;;  %s1828_s6 = inlined_call_operand.vmem [shape: f32[1,64], index: 6, kind: input, shape index: {}]   ;;  %s1829_s7 = inlined_call_operand.vmem [shape: f32[1,64], index: 7, kind: input, shape index: {}]   ;;  %s1830_s8 = inlined_call_operand.vmem [shape: bf16[64,256], index: 8, kind: input, shape index: {}]   ;;  %s1831_s9 = inlined_call_operand.vmem [shape: f32[1,256], index: 9, kind: input, shape index: {}]   ;;  %s1832_s10 = inlined_call_operand.vmem [shape: bf16[256,64], index: 10, kind: input, shape index: {}]   ;;  %s1833_s11 = inlined_call_operand.vmem [shape: f32[1,64], index: 11, kind: input, shape index: {}]   ;;  %s1834_s12 = inlined_call_operand.hbm [shape: f32[2,8,64], index: 12, kind: output, shape index: {}]  }
   0x1   :  { %v1454_v0 = vld [vmem:[%s1822_s0] sm:$0xff] }
   0x2   :  { %v48_v1 = vsel %vm47_vm0, %v1454_v0, 0.0 }
   0x3   :  { %49 = vadd.xlane.f32.xlu0 %v48_v1 }
   0x4   :  { %17 = vsyncpa [#allocation3], 0  ;;  %v1461_v2 = vld [vmem:[%s1822_s0 + $0x8] sm:$0xff]  ;;  %v1374_v4 = vmov 64.0   ;;  %v1098_v21 = vld [vmem:[%s1825_s3 + $0x30] sm:$0xf] }
   0x5   :  { %v51_v3 = vsel %vm47_vm0, %v1461_v2, 0.0  ;;  %1306 = vrcp.f32 %v1374_v4  ;;  %v1244_v22 = vld [vmem:[%s1825_s3 + $0x34] sm:$0xf0]  ;;  %v1090_v24 = vld [vmem:[%s1825_s3 + $0x20] sm:$0xf]  ;;  %vm202_vm8 = vcmask 130048  }
   0x6   :  { %v1099_v23 = vor.u32 %v1244_v22, %v1098_v21  ;;  %v1242_v25 = vld [vmem:[%s1825_s3 + $0x24] sm:$0xf0]  ;;  %v1082_v27 = vld [vmem:[%s1825_s3 + $0x10] sm:$0xf]  ;;  %v1240_v28 = vld [vmem:[%s1825_s3 + $0x14] sm:$0xf0] }
   0x7   :  { %v1091_v26 = vor.u32 %v1242_v25, %v1090_v24  ;;  %v1083_v29 = vor.u32 %v1240_v28, %v1082_v27  ;;  %v1074_v30 = vld [vmem:[%s1825_s3] sm:$0xf]  ;;  %v1238_v31 = vld [vmem:[%s1825_s3 + $0x4] sm:$0xf0]  ;;  %v1243_v36 = vld [vmem:[%s1825_s3 + $0x34] sm:$0xf] }
   0x8   :  { %165 = vmatpush.bf16.msra.mxu1 %v1099_v23  ;;  %v1075_v33 = vor.u32 %v1238_v31, %v1074_v30  ;;  %v1100_v37 = vld [vmem:[%s1825_s3 + $0x38] sm:$0xf0]  ;;  %v1241_v39 = vld [vmem:[%s1825_s3 + $0x24] sm:$0xf]  ;;  %v1092_v40 = vld [vmem:[%s1825_s3 + $0x28] sm:$0xf0] }
   0x9   :  { %v1103_v38 = vor.u32 %v1243_v36, %v1100_v37  ;;  %v1095_v42 = vor.u32 %v1241_v39, %v1092_v40  ;;  %v1239_v44 = vld [vmem:[%s1825_s3 + $0x14] sm:$0xf]  ;;  %v1084_v45 = vld [vmem:[%s1825_s3 + $0x18] sm:$0xf0]  ;;  %v1237_v50 = vld [vmem:[%s1825_s3 + $0x4] sm:$0xf]  ;;  %v189_v36 = vlaneseq }
   0xa   :  { %v1087_v49 = vor.u32 %v1239_v44, %v1084_v45  ;;  %v1076_v51 = vld [vmem:[%s1825_s3 + $0x8] sm:$0xf0]  ;;  %v1300_v1 = vld [vmem:[%s1823_s1] ss:$0 sm:$0xff]  ;;  %s1375_s1 = smov 112   ;;  %s1377_s22 = smov 48  }
   0xb   :  { %52 = vadd.xlane.f32.xlu0 %v51_v3  ;;  %v1307_v5 = vpop.eup %1306  ;;  %v1079_v54 = vor.u32 %v1237_v50, %v1076_v51  ;;  %vm276_vm9 = vcmask 1043456   ;;  %s1378_s23 = smov 32   ;;  %s1379_s24 = smov 80   ;;  %v190_v37 = vshrl.u32 %v189_v36, 7  ;;  %v1381_v39 = vmov -1e+30  }
   0xc   :  { %v55_v6 = vmul.f32 64.0, %v1307_v5  ;;  %vm59_vm1 = vweird.f32 %v1307_v5  ;;  %166 = vmatpush.bf16.msra.mxu1 %v1091_v26  ;;  %s1380_s0 = smov 16   ;;  %vm246_vm11 = vcmask 64512   ;;  %s1382_s25 = smov 96   ;;  %vm680_vm12 = vcmask 261120  }
   0xd   :  { %vm683_vm13 = vcmask 392192   ;;  %s1383_s30 = smov [#allocation2]   ;;  %s1385_s16 = smov 8  }
   0xe   :  { %v56_v7 = vsub.f32 1.0, %v55_v6  ;;  %s1058_s13 = sshll.u32 %s1383_s30, 4  ;;  %s1059_s13 = int_to_ptr.vmem [resolvable:$true] %s1058_s13 }
  0x10   :  { %v57_v8 = vmul.f32 %v1307_v5, %v56_v7  ;;  %167 = vmatpush.bf16.msra.mxu1 %v1083_v29  ;;  %v1301_v7 = vld [vmem:[%s1824_s2] ss:$0 sm:$0xff]  ;;  %s1376_s2 = smov 64  }
  0x12   :  { %v58_v9 = vadd.f32 %v1307_v5, %v57_v8 }
  0x14   :  { %v1465_v10 = vsel %vm59_vm1, %v1307_v5, %v58_v9  ;;  %168 = vmatpush.bf16.msra.mxu1 %v1075_v33 }
  0x18   :  { %179 = vmatpush.bf16.msrb.mxu1 %v1103_v38  ;;  %v192_v38 = vand.u32 127, %v189_v36 }
  0x1a   :  { %vm193_vm10 = vcmp.le.s32.totalorder %v192_v38, %v190_v37 }
  0x1b   :  { %v1568_v40 = vsel %vm193_vm10, 0.0, %v1381_v39 }
  0x1c   :  { %180 = vmatpush.bf16.msrb.mxu1 %v1095_v42 }
  0x20   :  { %181 = vmatpush.bf16.msrb.mxu1 %v1087_v49 }
  0x24   :  { %182 = vmatpush.bf16.msrb.mxu1 %v1079_v54 }
  0x76   :  { %v50_v11 = vpop.xlane.xlu0 %49 }
  0x77   :  { %v61_v12 = vmul.f32 %v1465_v10, %v50_v11 }
  0x79   :  { %v1469_v13 = vsub.f32 %v1454_v0, %v61_v12 }
  0x7b   :  { %v65_v14 = vmul.f32 %v1469_v13, %v1469_v13 }
  0x7d   :  { %v67_v15 = vsel %vm47_vm0, %v65_v14, 0.0 }
  0x7e   :  { %68 = vadd.xlane.f32.xlu1 %v67_v15  ;;  %v53_v16 = vpop.xlane.xlu0 %52 }
  0x7f   :  { %v62_v17 = vmul.f32 %v1465_v10, %v53_v16 }
  0x81   :  { %v1476_v18 = vsub.f32 %v1461_v2, %v62_v17 }
  0x83   :  { %v66_v19 = vmul.f32 %v1476_v18, %v1476_v18 }
  0x85   :  { %v70_v20 = vsel %vm47_vm0, %v66_v19, 0.0 }
  0x86   :  { %71 = vadd.xlane.f32.xlu1 %v70_v20 }
  0xf1   :  { %v69_v32 = vpop.xlane.xlu1 %68 }
  0xf2   :  { %v73_v34 = vmul.f32 %v69_v32, %v1465_v10 }
  0xf4   :  { %v75_v35 = vadd.f32 1e-05, %v73_v34 }
  0xf6   :  { %1308 = vrsqrt.f32 %v75_v35  ;;  %vm83_vm3 = vweird.f32 %v75_v35 }
  0xf9   :  { %v72_v41 = vpop.xlane.xlu1 %71 }
  0xfa   :  { %v74_v43 = vmul.f32 %v72_v41, %v1465_v10 }
  0xfc   :  { %v1309_v46 = vpop.eup %1308  ;;  %v76_v47 = vadd.f32 1e-05, %v74_v43 }
  0xfd   :  { %v78_v48 = vmul.f32 %v1309_v46, %v75_v35  ;;  %vm84_vm2 = vweird.f32 %v1309_v46 }
  0xfe   :  { %1310 = vrsqrt.f32 %v76_v47  ;;  %vm85_vm4 = vmor %vm83_vm3, %vm84_vm2  ;;  %vm93_vm6 = vweird.f32 %v76_v47 }
  0xff   :  { %v79_v52 = vmul.f32 %v1309_v46, %v78_v48 }
 0x101   :  { %v80_v53 = vmul.f32 0.5, %v79_v52 }
 0x103   :  { %v81_v55 = vsub.f32 1.5, %v80_v53 }
 0x104   :  { %v1311_v56 = vpop.eup %1310 }
 0x105   :  { %v82_v57 = vmul.f32 %v1309_v46, %v81_v55  ;;  %v88_v58 = vmul.f32 %v1311_v56, %v76_v47  ;;  %vm94_vm5 = vweird.f32 %v1311_v56 }
 0x106   :  { %vm95_vm7 = vmor %vm93_vm6, %vm94_vm5 }
 0x107   :  { %v89_v59 = vmul.f32 %v1311_v56, %v88_v58  ;;  %v86_v60 = vsel %vm85_vm4, %v1309_v46, %v82_v57 }
 0x108   :  { %v97_v63 = vmul.f32 %v86_v60, %v1469_v13 }
 0x109   :  { %v90_v61 = vmul.f32 0.5, %v89_v59 }
 0x10a   :  { %v102_v6 = vmul.f32 %v1300_v1, %v97_v63 }
 0x10b   :  { %v91_v62 = vsub.f32 1.5, %v90_v61 }
 0x10c   :  { %v107_v9 = vadd.f32 %v1301_v7, %v102_v6 }
 0x10d   :  { %v92_v3 = vmul.f32 %v1311_v56, %v91_v62 }
 0x10f   :  { %v96_v4 = vsel %vm95_vm7, %v1311_v56, %v92_v3 }
 0x110   :  { %v98_v5 = vmul.f32 %v96_v4, %v1476_v18 }
 0x112   :  { %v103_v8 = vmul.f32 %v1300_v1, %v98_v5 }
 0x114   :  { %v108_v11 = vadd.f32 %v1301_v7, %v103_v8 }
 0x116   :  { %v117_v12 = vpack.c.bf16 %v108_v11, %v107_v9 }
 0x118   :  { %1104 = vmatmul.msk.bf16.vlgmr.msra.gmra.mxu1 %vm47_vm0, %v117_v12 }
 0x128   :  { %1105 = vmatmul.msk.bf16.vlgmr.msrb.gmra.mxu1 %vm47_vm0, %v117_v12 }
 0x195   :  { %v170_v13 = vpop.f32.mrf.mxu1 }
 0x196   :  { %v195_v14 = vpack.c.bf16 %v170_v13, %v170_v13 }
 0x198   :  { %v198_v15 = vunpack.c.l.b16 %v195_v14  ;;  %v207_v16 = vsel %vm202_vm8, %v195_v14, 0 }
 0x199   :  { %216 = vmatpush.bf16.xpose.msra.mxu2 %v207_v16 }
 0x19a   :  { %v199_v17 = vpack.c.b16 %v198_v15, %v198_v15 }
 0x19c   :  { %314 = vrot.lane.b32.xlu0 %v199_v17, %s1375_s1  ;;  %200 = vrot.lane.b32.xlu1 %v199_v17, %s1376_s2 }
 0x19d   :  { %v172_v18 = vpop.f32.mrf.mxu1 }
 0x19e   :  { %v196_v19 = vpack.c.bf16 %v172_v18, %v172_v18 }
 0x1a0   :  { %v223_v20 = vunpack.c.l.b16 %v196_v19  ;;  %v231_v21 = vsel %vm202_vm8, %v196_v19, 0 }
 0x1a1   :  { %240 = vmatpush.bf16.xpose.msra.mxu3 %v231_v21 }
 0x1a2   :  { %v1544_v22 = vpack.c.b16 %v223_v20, %v223_v20 }
 0x1a4   :  { %312 = vrot.lane.b32.xlu0 %v199_v17, %s1377_s22  ;;  %337 = vrot.lane.b32.xlu1 %v1544_v22, %s1375_s1 }
 0x1a5   :  { %225 = vrot.lane.b32.xlu2 %v1544_v22, %s1376_s2  ;;  %v184_v23 = vpop.f32.mrf.mxu1 }
 0x1a6   :  { %v1550_v24 = vpack.c.bf16 %v184_v23, %v184_v23 }
 0x1a8   :  { %v278_v25 = vsel %vm276_vm9, %v1550_v24, 0 }
 0x1a9   :  { %287 = vmatpush.bf16.msrb.mxu2 %v278_v25 }
 0x1ac   :  { %335 = vrot.lane.b32.xlu1 %v1544_v22, %s1377_s22 }
 0x1ad   :  { %v186_v26 = vpop.f32.mrf.mxu1 }
 0x1ae   :  { %v1556_v27 = vpack.c.bf16 %v186_v26, %v186_v26 }
 0x1b0   :  { %v297_v28 = vsel %vm276_vm9, %v1556_v27, 0 }
 0x1b1   :  { %306 = vmatpush.bf16.msra.mxu0 %v297_v28 }
 0x1b4   :  { %430 = vrot.lane.b32.xlu1 %v199_v17, %s1378_s23 }
 0x1bc   :  { %544 = vrot.lane.b32.xlu1 %v199_v17, %s1379_s24 }
 0x1c4   :  { %542 = vrot.lane.b32.xlu1 %v199_v17, %s1380_s0 }
 0x1ff   :  { %v226_v29 = vpop.permute.xlu2 %225 }
 0x200   :  { %1107 = vmatmul.msk.bf16.vlgmr.msra.gmra.mxu3 %vm202_vm8, %v226_v29 }
 0x20e   :  { %v315_v30 = vpop.permute.xlu0 %314  ;;  %v201_v31 = vpop.permute.xlu1 %200 }
 0x20f   :  { %1106 = vmatmul.msk.bf16.vlgmr.msra.gmra.mxu2 %vm202_vm8, %v201_v31  ;;  %v320_v32 = vsel %vm202_vm8, %v315_v30, 0 }
 0x210   :  { %329 = vmatpush.bf16.xpose.msrb.mxu0 %v320_v32 }
 0x216   :  { %v338_v33 = vpop.permute.xlu1 %337  ;;  %v313_v58 = vpop.permute.xlu0 %312 }
 0x217   :  { %v343_v34 = vsel %vm202_vm8, %v338_v33, 0 }
 0x218   :  { %352 = vmatpush.bf16.xpose.msra.mxu1 %v343_v34 }
 0x21e   :  { %v336_v35 = vpop.permute.xlu1 %335 }
 0x21f   :  { %1111 = vmatmul.msk.bf16.vlgmr.msra.gmra.mxu1 %vm202_vm8, %v336_v35 }
 0x226   :  { %v431_v3 = vpop.permute.xlu1 %430 }
 0x22e   :  { %v545_v6 = vpop.permute.xlu1 %544 }
 0x22f   :  { %v550_v8 = vsel %vm202_vm8, %v545_v6, 0 }
 0x236   :  { %v543_v13 = vpop.permute.xlu1 %542 }
 0x283   :  { %v242_v41 = vpop.f32.mrf.mxu3 }
 0x284   :  { %v243_v42 = vadd.f32 %v242_v41, %v1568_v40 }
 0x286   :  { %v250_v43 = vsel %vm246_vm11, %v243_v42, -inf }
 0x287   :  { %251 = vmax.xlane.f32.xlu2 %v250_v43  ;;  %v383_v43 = vunpack.c.l.b16 %v1550_v24 }
 0x28b   :  { %v244_v44 = vpop.f32.mrf.mxu3 }
 0x292   :  { %v218_v45 = vpop.f32.mrf.mxu2 }
 0x293   :  { %v219_v56 = vadd.f32 %v218_v45, %v1568_v40 }
 0x295   :  { %v247_v57 = vsel %vm246_vm11, %v219_v56, -inf }
 0x29a   :  { %v220_v46 = vpop.f32.mrf.mxu2 }
 0x29c   :  { %v354_v47 = vpop.f32.mrf.mxu1 }
 0x29d   :  { %v1576_v49 = vadd.f32 %v354_v47, %v1568_v40  ;;  %v384_v47 = vpack.c.b16 %v383_v43, %v383_v43 }
 0x29f   :  { %432 = vrot.lane.b32.xlu2 %v199_v17, %s1382_s25  ;;  %v361_v50 = vsel %vm246_vm11, %v1576_v49, -inf }
 0x2a4   :  { %v356_v48 = vpop.f32.mrf.mxu1 }
 0x2a7   :  { %565 = vrot.lane.b32.xlu2 %v1544_v22, %s1380_s0 }
 0x2d0   :  { %362 = vmax.xlane.f32.xlu2 %v361_v50  ;;  %v407_v50 = vunpack.c.l.b16 %v1556_v27 }
 0x2fa   :  { %v252_v51 = vpop.xlane.xlu2 %251 }
 0x2fb   :  { %v254_v52 = vsub.f32 %v243_v42, %v252_v51 }
 0x2fd   :  { %v257_v53 = vmul.f32 1.442695, %v254_v52  ;;  %v408_v52 = vpack.c.b16 %v407_v50, %v407_v50 }
 0x2ff   :  { %1312 = vpow2.f32 %v257_v53 }
 0x302   :  { %v433_v62 = vpop.permute.xlu2 %432 }
 0x303   :  { %v438_v1 = vsel %vm202_vm8, %v433_v62, 0 }
 0x305   :  { %v1313_v54 = vpop.eup %1312 }
 0x306   :  { %v262_v55 = vsel %vm246_vm11, %v1313_v54, 0.0 }
 0x307   :  { %263 = vadd.xlane.f32.xlu0 %v262_v55 }
 0x30a   :  { %v566_v12 = vpop.permute.xlu2 %565 }
 0x31b   :  { %455 = vrot.lane.b32.xlu0 %v1544_v22, %s1382_s25 }
 0x323   :  { %453 = vrot.lane.b32.xlu0 %v1544_v22, %s1378_s23 }
 0x32b   :  { %567 = vrot.lane.b32.xlu0 %v1544_v22, %s1379_s24 }
 0x343   :  { %v363_v26 = vpop.xlane.xlu2 %362 }
 0x344   :  { %v365_v31 = vsub.f32 %v1576_v49, %v363_v26 }
 0x346   :  { %v368_v33 = vmul.f32 1.442695, %v365_v31 }
 0x355   :  { %248 = vmax.xlane.f32.xlu0 %v247_v57 }
 0x37a   :  { %v264_v59 = vpop.xlane.xlu0 %263 }
 0x37b   :  { %1314 = vrcp.f32 %v264_v59 }
 0x381   :  { %v1315_v60 = vpop.eup %1314 }
 0x382   :  { %v268_v61 = vmul.f32 %v1315_v60, %v1313_v54 }
 0x384   :  { %v270_v63 = vpack.c.bf16 %v268_v61, %v268_v61 }
 0x386   :  { %1109 = vmatmul.msk.bf16.vlgmr.msra.gmra.mxu0 %vm246_vm11, %v270_v63 }
 0x387   :  { %447 = vmatpush.bf16.xpose.msra.mxu0 %v438_v1 }
 0x38d   :  { %v456_v4 = vpop.permute.xlu0 %455 }
 0x38e   :  { %v461_v5 = vsel %vm202_vm8, %v456_v4, 0 }
 0x38f   :  { %470 = vmatpush.bf16.xpose.msrb.mxu1 %v461_v5 }
 0x395   :  { %v454_v7 = vpop.permute.xlu0 %453 }
 0x396   :  { %1110 = vmatmul.msk.bf16.vlgmr.msrb.gmra.mxu0 %vm202_vm8, %v313_v58  ;;  %1115 = vmatmul.msk.bf16.vlgmr.msrb.gmra.mxu1 %vm202_vm8, %v454_v7 }
 0x397   :  { %559 = vmatpush.bf16.xpose.msrb.mxu0 %v550_v8 }
 0x39d   :  { %v568_v9 = vpop.permute.xlu0 %567 }
 0x39e   :  { %v573_v11 = vsel %vm202_vm8, %v568_v9, 0 }
 0x39f   :  { %582 = vmatpush.bf16.xpose.msra.mxu1 %v573_v11 }
 0x3a6   :  { %1114 = vmatmul.msk.bf16.vlgmr.msra.gmra.mxu0 %vm202_vm8, %v431_v3  ;;  %1119 = vmatmul.msk.bf16.vlgmr.msra.gmra.mxu1 %vm202_vm8, %v566_v12 }
 0x3b6   :  { %1118 = vmatmul.msk.bf16.vlgmr.msrb.gmra.mxu0 %vm202_vm8, %v543_v13 }
 0x3c8   :  { %v249_v15 = vpop.xlane.xlu0 %248 }
 0x3c9   :  { %v253_v17 = vsub.f32 %v219_v56, %v249_v15 }
 0x3cb   :  { %v255_v18 = vmul.f32 1.442695, %v253_v17 }
 0x3cd   :  { %1316 = vpow2.f32 %v255_v18 }
 0x3ce   :  { %1318 = vpow2.f32 %v368_v33 }
 0x3d3   :  { %v1317_v28 = vpop.eup %1316 }
 0x3d4   :  { %v259_v32 = vsel %vm246_vm11, %v1317_v28, 0.0  ;;  %v1609_v38 = vpop.eup %1318 }
 0x3d5   :  { %v373_v42 = vsel %vm246_vm11, %v1609_v38, 0.0 }
 0x403   :  { %v1599_v14 = vpop.f32.mrf.mxu0 }
 0x40b   :  { %v310_v16 = vpop.f32.mrf.mxu0 }
 0x413   :  { %v331_v19 = vpop.f32.mrf.mxu0  ;;  %v472_v20 = vpop.f32.mrf.mxu1 }
 0x414   :  { %v332_v21 = vadd.f32 %v331_v19, %v1568_v40  ;;  %v473_v22 = vadd.f32 %v472_v20, %v1568_v40 }
 0x416   :  { %v479_v23 = vsel %vm246_vm11, %v473_v22, -inf  ;;  %v358_v25 = vsel %vm246_vm11, %v332_v21, -inf }
 0x417   :  { %480 = vmax.xlane.f32.xlu2 %v479_v23  ;;  %359 = vmax.xlane.f32.xlu1 %v358_v25 }
 0x41b   :  { %v333_v29 = vpop.f32.mrf.mxu0  ;;  %v474_v30 = vpop.f32.mrf.mxu1 }
 0x41f   :  { %260 = vadd.xlane.f32.xlu2 %v259_v32 }
 0x423   :  { %v449_v34 = vpop.f32.mrf.mxu0  ;;  %v584_v35 = vpop.f32.mrf.mxu1 }
 0x424   :  { %v585_v36 = vadd.f32 %v584_v35, %v1568_v40  ;;  %v450_v44 = vadd.f32 %v449_v34, %v1568_v40 }
 0x426   :  { %v591_v37 = vsel %vm246_vm11, %v585_v36, -inf  ;;  %v476_v48 = vsel %vm246_vm11, %v450_v44, -inf }
 0x427   :  { %592 = vmax.xlane.f32.xlu0 %v591_v37 }
 0x42b   :  { %v451_v39 = vpop.f32.mrf.mxu0  ;;  %v586_v41 = vpop.f32.mrf.mxu1 }
 0x42f   :  { %374 = vadd.xlane.f32.xlu0 %v373_v42 }
 0x433   :  { %v561_v45 = vpop.f32.mrf.mxu0 }
 0x434   :  { %v562_v46 = vadd.f32 %v561_v45, %v1568_v40 }
 0x436   :  { %v588_v49 = vsel %vm246_vm11, %v562_v46, -inf }
 0x437   :  { %385 = vrot.lane.b32.xlu2 %v384_v47, %s1375_s1  ;;  %477 = vmax.xlane.f32.xlu0 %v476_v48 }
 0x438   :  { %589 = vmax.xlane.f32.xlu1 %v588_v49 }
 0x43b   :  { %v563_v51 = vpop.f32.mrf.mxu0 }
 0x43f   :  { %521 = vrot.lane.b32.xlu2 %v408_v52, %s1382_s25 }
 0x48a   :  { %v481_v24 = vpop.xlane.xlu2 %480  ;;  %v360_v53 = vpop.xlane.xlu1 %359 }
 0x48b   :  { %v483_v54 = vsub.f32 %v473_v22, %v481_v24  ;;  %v364_v55 = vsub.f32 %v332_v21, %v360_v53 }
 0x48d   :  { %v486_v40 = vmul.f32 1.442695, %v483_v54  ;;  %v366_v56 = vmul.f32 1.442695, %v364_v55 }
 0x48f   :  { %1320 = vpow2.f32 %v486_v40 }
 0x490   :  { %1322 = vpow2.f32 %v366_v56 }
 0x492   :  { %v261_v57 = vpop.xlane.xlu2 %260 }
 0x493   :  { %1324 = vrcp.f32 %v261_v57 }
 0x495   :  { %v1621_v58 = vpop.eup %1320 }
 0x496   :  { %v1323_v59 = vpop.eup %1322  ;;  %v491_v27 = vsel %vm246_vm11, %v1621_v58, 0.0 }
 0x497   :  { %492 = vadd.xlane.f32.xlu0 %v491_v27  ;;  %v370_v60 = vsel %vm246_vm11, %v1323_v59, 0.0 }
 0x498   :  { %371 = vadd.xlane.f32.xlu1 %v370_v60 }
 0x499   :  { %v1325_v61 = vpop.eup %1324 }
 0x49a   :  { %v267_v62 = vmul.f32 %v1325_v61, %v1317_v28  ;;  %v593_v63 = vpop.xlane.xlu0 %592  ;;  %v386_v1 = vpop.permute.xlu2 %385 }
 0x49b   :  { %v595_v3 = vsub.f32 %v585_v36, %v593_v63  ;;  %v391_v4 = vsel %vm276_vm9, %v386_v1, 0 }
 0x49c   :  { %400 = vmatpush.bf16.msra.mxu2 %v391_v4  ;;  %v269_v5 = vpack.c.bf16 %v267_v62, %v267_v62 }
 0x49d   :  { %v598_v6 = vmul.f32 1.442695, %v595_v3 }
 0x49e   :  { %1108 = vmatmul.msk.bf16.vlgmr.msrb.gmra.mxu2 %vm246_vm11, %v269_v5 }
 0x49f   :  { %1326 = vpow2.f32 %v598_v6 }
 0x4a2   :  { %v375_v9 = vpop.xlane.xlu0 %374  ;;  %v522_v34 = vpop.permute.xlu2 %521 }
 0x4a3   :  { %v527_v37 = vsel %vm276_vm9, %v522_v34, 0 }
 0x4a5   :  { %v1628_v7 = vpop.eup %1326 }
 0x4a6   :  { %v603_v8 = vsel %vm246_vm11, %v1628_v7, 0.0 }
 0x4a7   :  { %604 = vadd.xlane.f32.xlu2 %v603_v8 }
 0x4aa   :  { %v478_v11 = vpop.xlane.xlu0 %477 }
 0x4ab   :  { %500 = vrot.lane.b32.xlu0 %v384_v47, %s1382_s25  ;;  %v482_v12 = vsub.f32 %v450_v44, %v478_v11  ;;  %v590_v13 = vpop.xlane.xlu1 %589  ;;  %v1248_v11 = vld [vmem:[%s1826_s4 + $0x18] sm:$0xff] }
 0x4ac   :  { %v594_v16 = vsub.f32 %v562_v46, %v590_v13  ;;  %730 = vmatpush.bf16.msra.mxu0 %v1248_v11  ;;  %v1246_v13 = vld [vmem:[%s1826_s4 + $0x8] sm:$0xff] }
 0x4ad   :  { %v484_v15 = vmul.f32 1.442695, %v482_v12  ;;  %v1247_v12 = vld [vmem:[%s1826_s4 + $0x10] sm:$0xff] }
 0x4ae   :  { %v596_v17 = vmul.f32 1.442695, %v594_v16 }
 0x4af   :  { %1328 = vpow2.f32 %v484_v15  ;;  %v1245_v15 = vld [vmem:[%s1826_s4] sm:$0xff]  ;;  %s1060_s4 = sshll.u32 %s1834_s12, 4  ;;  %s1061_s4 = int_to_ptr.hbm [resolvable:$true] %s1060_s4 }
 0x4b0   :  { %1330 = vpow2.f32 %v596_v17  ;;  %731 = vmatpush.bf16.msra.mxu0 %v1247_v12  ;;  %v1143_v12 = vld [vmem:[%s1830_s8 + $0x8] sm:$0xf0] }
 0x4b1   :  { %409 = vrot.lane.b32.xlu1 %v408_v52, %s1375_s1 }
 0x4b4   :  { %732 = vmatpush.bf16.msra.mxu0 %v1246_v13 }
 0x4b5   :  { %v1329_v18 = vpop.eup %1328 }
 0x4b6   :  { %v488_v19 = vsel %vm246_vm11, %v1329_v18, 0.0  ;;  %v1331_v20 = vpop.eup %1330 }
 0x4b7   :  { %v600_v21 = vsel %vm246_vm11, %v1331_v20, 0.0 }
 0x4b8   :  { %733 = vmatpush.bf16.msra.mxu0 %v1245_v15  ;;  %v1264_v15 = vld [vmem:[%s1832_s10 + $0x38] sm:$0xff] }
 0x4d5   :  { %489 = vadd.xlane.f32.xlu0 %v488_v19 }
 0x4db   :  { %601 = vadd.xlane.f32.xlu1 %v600_v21 }
 0x4e9   :  { %612 = vrot.lane.b32.xlu0 %v384_v47, %s1379_s24 }
 0x4f1   :  { %633 = vrot.lane.b32.xlu0 %v408_v52, %s1379_s24 }
 0x50a   :  { %v493_v26 = vpop.xlane.xlu0 %492 }
 0x50b   :  { %v372_v22 = vpop.xlane.xlu1 %371 }
 0x50c   :  { %1332 = vrcp.f32 %v372_v22 }
 0x50d   :  { %1334 = vrcp.f32 %v375_v9 }
 0x50e   :  { %1336 = vrcp.f32 %v493_v26 }
 0x512   :  { %v1333_v23 = vpop.eup %1332 }
 0x513   :  { %v378_v25 = vmul.f32 %v1333_v23, %v1323_v59  ;;  %v1335_v31 = vpop.eup %1334 }
 0x514   :  { %v379_v33 = vmul.f32 %v1335_v31, %v1609_v38  ;;  %v1337_v42 = vpop.eup %1336 }
 0x515   :  { %v380_v28 = vpack.c.bf16 %v378_v25, %v378_v25  ;;  %v497_v43 = vmul.f32 %v1337_v42, %v1621_v58 }
 0x516   :  { %v381_v39 = vpack.c.bf16 %v379_v33, %v379_v33 }
 0x517   :  { %1112 = vmatmul.msk.bf16.vlgmr.msra.gmra.mxu2 %vm246_vm11, %v380_v28  ;;  %v499_v44 = vpack.c.bf16 %v497_v43, %v497_v43 }
 0x51a   :  { %v605_v49 = vpop.xlane.xlu2 %604 }
 0x51d   :  { %v501_v29 = vpop.permute.xlu0 %500 }
 0x51e   :  { %v506_v30 = vsel %vm276_vm9, %v501_v29, 0 }
 0x51f   :  { %515 = vmatpush.bf16.msrb.mxu2 %v506_v30 }
 0x521   :  { %v1640_v32 = vpop.f32.mrf.mxu2 }
 0x523   :  { %v410_v35 = vpop.permute.xlu1 %409 }
 0x524   :  { %v415_v36 = vsel %vm276_vm9, %v410_v35, 0  ;;  %v1302_v35 = vld [vmem:[%s1827_s5] ss:$0 sm:$0xff] }
 0x525   :  { %424 = vmatpush.bf16.msrb.mxu3 %v415_v36 }
 0x528   :  { %1113 = vmatmul.msk.bf16.vlgmr.msrb.gmra.mxu3 %vm246_vm11, %v381_v39 }
 0x529   :  { %536 = vmatpush.bf16.msra.mxu3 %v527_v37  ;;  %v291_v41 = vpop.f32.mrf.mxu2 }
 0x538   :  { %1117 = vmatmul.msk.bf16.vlgmr.msra.gmra.mxu3 %vm246_vm11, %v499_v44 }
 0x548   :  { %v490_v38 = vpop.xlane.xlu0 %489 }
 0x549   :  { %1338 = vrcp.f32 %v490_v38 }
 0x54e   :  { %v602_v48 = vpop.xlane.xlu1 %601 }
 0x54f   :  { %v1339_v45 = vpop.eup %1338  ;;  %1340 = vrcp.f32 %v602_v48 }
 0x550   :  { %v496_v46 = vmul.f32 %v1339_v45, %v1329_v18  ;;  %1342 = vrcp.f32 %v605_v49 }
 0x552   :  { %v498_v47 = vpack.c.bf16 %v496_v46, %v496_v46 }
 0x554   :  { %1116 = vmatmul.msk.bf16.vlgmr.msrb.gmra.mxu2 %vm246_vm11, %v498_v47 }
 0x555   :  { %v1341_v50 = vpop.eup %1340 }
 0x556   :  { %v608_v24 = vmul.f32 %v1341_v50, %v1331_v20  ;;  %v1343_v53 = vpop.eup %1342 }
 0x557   :  { %v609_v54 = vmul.f32 %v1343_v53, %v1628_v7 }
 0x558   :  { %v610_v55 = vpack.c.bf16 %v608_v24, %v608_v24  ;;  %v1255_v24 = vld [vmem:[%s1830_s8 + $0x34] sm:$0xf] }
 0x559   :  { %v611_v57 = vpack.c.bf16 %v609_v54, %v609_v54  ;;  %v1167_v54 = vld [vmem:[%s1830_s8 + $0x38] sm:$0xf0] }
 0x55b   :  { %v613_v51 = vpop.permute.xlu0 %612 }
 0x55c   :  { %v618_v52 = vsel %vm276_vm9, %v613_v51, 0  ;;  %v1165_v51 = vld [vmem:[%s1830_s8 + $0x30] sm:$0xf] }
 0x55d   :  { %627 = vmatpush.bf16.msra.mxu2 %v618_v52  ;;  %v1256_v52 = vld [vmem:[%s1830_s8 + $0x34] sm:$0xf0] }
 0x55e   :  { %v1166_v53 = vor.u32 %v1256_v52, %v1165_v51  ;;  %v1269_v51 = vld [vmem:[%s1832_s10 + $0x60] sm:$0xff]  ;;  %v1268_v52 = vld [vmem:[%s1832_s10 + $0x58] sm:$0xff] }
 0x560   :  { %860 = vmatpush.bf16.msrb.mxu1 %v1166_v53  ;;  %v1267_v53 = vld [vmem:[%s1832_s10 + $0x50] sm:$0xff] }
 0x563   :  { %v634_v40 = vpop.permute.xlu0 %633 }
 0x564   :  { %v639_v56 = vsel %vm276_vm9, %v634_v40, 0  ;;  %1120 = vmatmul.msk.bf16.vlgmr.msra.gmra.mxu2 %vm246_vm11, %v610_v55  ;;  %v1170_v55 = vor.u32 %v1255_v24, %v1167_v54  ;;  %v1157_v40 = vld [vmem:[%s1830_s8 + $0x20] sm:$0xf]  ;;  %v1258_v24 = vld [vmem:[%s1832_s10 + $0x8] sm:$0xff] }
 0x565   :  { %648 = vmatpush.bf16.msrb.mxu3 %v639_v56  ;;  %v1254_v56 = vld [vmem:[%s1830_s8 + $0x24] sm:$0xf0]  ;;  %v1257_v54 = vld [vmem:[%s1832_s10] sm:$0xff] }
 0x566   :  { %874 = vmatpush.bf16.msrb.mxu2 %v1170_v55  ;;  %v1266_v55 = vld [vmem:[%s1832_s10 + $0x48] sm:$0xff] }
 0x568   :  { %1121 = vmatmul.msk.bf16.vlgmr.msrb.gmra.mxu3 %vm246_vm11, %v611_v57  ;;  %v1253_v57 = vld [vmem:[%s1830_s8 + $0x24] sm:$0xf] }
 0x569   :  { %1022 = vmatpush.bf16.msra.mxu3 %v1264_v15 }
 0x59a   :  { %v402_v58 = vpop.f32.mrf.mxu2 }
 0x5a2   :  { %v404_v59 = vpop.f32.mrf.mxu2 }
 0x5a3   :  { %v1159_v59 = vld [vmem:[%s1830_s8 + $0x28] sm:$0xf0] }
 0x5ab   :  { %v426_v27 = vpop.f32.mrf.mxu3 }
 0x5ac   :  { %v1285_v60 = vpack.i.bf16 %v426_v27, %v402_v58  ;;  %v1158_v58 = vor.u32 %v1254_v56, %v1157_v40  ;;  %v1162_v27 = vor.u32 %v1253_v57, %v1159_v59  ;;  %v1265_v40 = vld [vmem:[%s1832_s10 + $0x40] sm:$0xff] }
 0x5ad   :  { %v807_v56 = vld [vmem:[%s1831_s9] sm:$0x3] }
 0x5ae   :  { %1286 = vrot.lane.b32.xlu0 %v1285_v60, %s1380_s0  ;;  %861 = vmatpush.bf16.msrb.mxu1 %v1158_v58  ;;  %v1149_v60 = vld [vmem:[%s1830_s8 + $0x10] sm:$0xf]  ;;  %v809_v58 = vperm.slane %v807_v56, 0 }
 0x5af   :  { %875 = vmatpush.bf16.msrb.mxu2 %v1162_v27 }
 0x5b3   :  { %v428_v61 = vpop.f32.mrf.mxu3 }
 0x5b4   :  { %v1252_v61 = vld [vmem:[%s1830_s8 + $0x14] sm:$0xf0] }
 0x5bb   :  { %v538_v62 = vpop.f32.mrf.mxu3 }
 0x5c3   :  { %v540_v63 = vpop.f32.mrf.mxu3 }
 0x5c4   :  { %v1150_v63 = vor.u32 %v1252_v61, %v1149_v60  ;;  %v810_v61 = vperm.slane %v807_v56, 1 }
 0x5c6   :  { %862 = vmatpush.bf16.msrb.mxu1 %v1150_v63 }
 0x5d7   :  { %v517_v1 = vpop.f32.mrf.mxu2 }
 0x5d8   :  { %v1290_v3 = vpack.i.bf16 %v538_v62, %v517_v1  ;;  %v1251_v62 = vld [vmem:[%s1830_s8 + $0x14] sm:$0xf]  ;;  %v1151_v1 = vld [vmem:[%s1830_s8 + $0x18] sm:$0xf0] }
 0x5da   :  { %1291 = vrot.lane.b32.xlu0 %v1290_v3, %s1378_s23 }
 0x5df   :  { %v519_v4 = vpop.f32.mrf.mxu2 }
 0x5e0   :  { %v1154_v4 = vor.u32 %v1251_v62, %v1151_v1 }
 0x5e2   :  { %876 = vmatpush.bf16.msrb.mxu2 %v1154_v4 }
 0x5e7   :  { %v629_v5 = vpop.f32.mrf.mxu2 }
 0x5eb   :  { %v650_v6 = vpop.f32.mrf.mxu3 }
 0x5ec   :  { %v1295_v7 = vpack.i.bf16 %v650_v6, %v629_v5  ;;  %v1141_v6 = vld [vmem:[%s1830_s8] sm:$0xf] }
 0x5ee   :  { %1296 = vrot.lane.b32.xlu1 %v1295_v7, %s1377_s22  ;;  %v1250_v7 = vld [vmem:[%s1830_s8 + $0x4] sm:$0xf0] }
 0x5ef   :  { %v631_v8 = vpop.f32.mrf.mxu2  ;;  %v1142_v11 = vor.u32 %v1250_v7, %v1141_v6 }
 0x5f0   :  { %v1249_v8 = vld [vmem:[%s1830_s8 + $0x4] sm:$0xf] }
 0x5f1   :  { %v1146_v13 = vor.u32 %v1249_v8, %v1143_v12  ;;  %863 = vmatpush.bf16.msrb.mxu1 %v1142_v11  ;;  %v1305_v11 = vld [vmem:[%s1833_s11] ss:$0 sm:$0xff]  ;;  %s1384_s11 = smov 128  }
 0x5f3   :  { %v652_v9 = vpop.f32.mrf.mxu3  ;;  %877 = vmatpush.bf16.msrb.mxu2 %v1146_v13 }
 0x620   :  { %v1287_v16 = vpop.permute.xlu0 %1286 }
 0x621   :  { %v1289_v18 = vunpack.i.h.bf16 %v1287_v16  ;;  %v1288_v19 = vunpack.i.l.bf16 %v1287_v16  ;;  %v1272_v16 = vld [vmem:[%s1832_s10 + $0x78] sm:$0xff] }
 0x622   :  { %1036 = vmatpush.bf16.msrb.mxu0 %v1272_v16 }
 0x623   :  { %v679_v23 = vsel %vm202_vm8, %v1599_v14, %v1289_v18  ;;  %v678_v25 = vsel %vm202_vm8, %v1640_v32, %v1288_v19  ;;  %v1263_v19 = vld [vmem:[%s1832_s10 + $0x30] sm:$0xff] }
 0x624   :  { %1023 = vmatpush.bf16.msra.mxu3 %v1263_v19 }
 0x64c   :  { %v1292_v17 = vpop.permute.xlu0 %1291 }
 0x64d   :  { %v1294_v20 = vunpack.i.h.bf16 %v1292_v17  ;;  %v1293_v21 = vunpack.i.l.bf16 %v1292_v17 }
 0x64f   :  { %v682_v29 = vsel %vm680_vm12, %v679_v23, %v1294_v20  ;;  %v681_v30 = vsel %vm680_vm12, %v678_v25, %v1293_v21  ;;  %v1271_v20 = vld [vmem:[%s1832_s10 + $0x70] sm:$0xff]  ;;  %v1262_v25 = vld [vmem:[%s1832_s10 + $0x28] sm:$0xff] }
 0x650   :  { %1037 = vmatpush.bf16.msrb.mxu0 %v1271_v20  ;;  %1024 = vmatpush.bf16.msra.mxu3 %v1262_v25 }
 0x660   :  { %v1297_v22 = vpop.permute.xlu1 %1296 }
 0x661   :  { %v1299_v26 = vunpack.i.h.bf16 %v1297_v22  ;;  %v1298_v28 = vunpack.i.l.bf16 %v1297_v22 }
 0x663   :  { %v685_v31 = vsel %vm683_vm13, %v682_v29, %v1299_v26  ;;  %v684_v33 = vsel %vm683_vm13, %v681_v30, %v1298_v28  ;;  %v1261_v29 = vld [vmem:[%s1832_s10 + $0x20] sm:$0xff] }
 0x664   :  { %v694_v34 = vpack.c.bf16 %v685_v31, %v684_v33  ;;  %1025 = vmatpush.bf16.msra.mxu3 %v1261_v29 }
 0x666   :  { %1138 = vmatmul.msk.bf16.vlgmr.msra.gmra.mxu0 %vm47_vm0, %v694_v34 }
 0x6e3   :  { %v735_v36 = vpop.f32.mrf.mxu0 }
 0x6e4   :  { %v736_v37 = vadd.f32 %v1302_v35, %v735_v36 }
 0x6e6   :  { %v1678_v14 = vadd.f32 %v736_v37, %v1454_v0 }
 0x6e8   :  { %v744_v32 = vsel %vm47_vm0, %v1678_v14, 0.0 }
 0x6e9   :  { %745 = vadd.xlane.f32.xlu0 %v744_v32 }
 0x6eb   :  { %v737_v39 = vpop.f32.mrf.mxu0 }
 0x6ec   :  { %v738_v41 = vadd.f32 %v1302_v35, %v737_v39  ;;  %v1303_v39 = vld [vmem:[%s1828_s6] ss:$0 sm:$0xff] }
 0x6ee   :  { %v1683_v42 = vadd.f32 %v738_v41, %v1461_v2 }
 0x6f0   :  { %v747_v43 = vsel %vm47_vm0, %v1683_v42, 0.0 }
 0x6f1   :  { %748 = vadd.xlane.f32.xlu2 %v747_v43 }
 0x75c   :  { %v746_v44 = vpop.xlane.xlu0 %745 }
 0x75d   :  { %v750_v38 = vmul.f32 %v746_v44, %v1465_v10 }
 0x75f   :  { %v1689_v45 = vsub.f32 %v1678_v14, %v750_v38  ;;  %v1304_v38 = vld [vmem:[%s1829_s7] ss:$0 sm:$0xff] }
 0x761   :  { %v754_v0 = vmul.f32 %v1689_v45, %v1689_v45 }
 0x763   :  { %v756_v46 = vsel %vm47_vm0, %v754_v0, 0.0 }
 0x764   :  { %v749_v47 = vpop.xlane.xlu2 %748  ;;  %757 = vadd.xlane.f32.xlu2 %v756_v46 }
 0x765   :  { %v751_v2 = vmul.f32 %v749_v47, %v1465_v10 }
 0x767   :  { %v1696_v48 = vsub.f32 %v1683_v42, %v751_v2 }
 0x769   :  { %v755_v49 = vmul.f32 %v1696_v48, %v1696_v48 }
 0x76b   :  { %v759_v50 = vsel %vm47_vm0, %v755_v49, 0.0 }
 0x76c   :  { %760 = vadd.xlane.f32.xlu2 %v759_v50 }
 0x7d7   :  { %v758_v3 = vpop.xlane.xlu2 %757 }
 0x7d8   :  { %v762_v5 = vmul.f32 %v758_v3, %v1465_v10 }
 0x7da   :  { %v764_v9 = vadd.f32 1e-05, %v762_v5 }
 0x7dc   :  { %1344 = vrsqrt.f32 %v764_v9  ;;  %vm772_vm15 = vweird.f32 %v764_v9 }
 0x7df   :  { %v761_v17 = vpop.xlane.xlu2 %760 }
 0x7e0   :  { %v763_v18 = vmul.f32 %v761_v17, %v1465_v10  ;;  %v1270_v10 = vld [vmem:[%s1832_s10 + $0x68] sm:$0xff] }
 0x7e1   :  { %1038 = vmatpush.bf16.msrb.mxu0 %v1270_v10 }
 0x7e2   :  { %v1345_v21 = vpop.eup %1344  ;;  %v765_v22 = vadd.f32 1e-05, %v763_v18 }
 0x7e3   :  { %v767_v23 = vmul.f32 %v1345_v21, %v764_v9  ;;  %vm773_vm14 = vweird.f32 %v1345_v21 }
 0x7e4   :  { %1346 = vrsqrt.f32 %v765_v22  ;;  %vm774_vm1 = vmor %vm772_vm15, %vm773_vm14  ;;  %vm782_vm3 = vweird.f32 %v765_v22 }
 0x7e5   :  { %v768_v26 = vmul.f32 %v1345_v21, %v767_v23  ;;  %1039 = vmatpush.bf16.msrb.mxu0 %v1269_v51 }
 0x7e7   :  { %v769_v28 = vmul.f32 0.5, %v768_v26 }
 0x7e9   :  { %v770_v30 = vsub.f32 1.5, %v769_v28  ;;  %1040 = vmatpush.bf16.msrb.mxu0 %v1268_v52 }
 0x7ea   :  { %v1347_v31 = vpop.eup %1346 }
 0x7eb   :  { %v771_v33 = vmul.f32 %v1345_v21, %v770_v30  ;;  %v777_v34 = vmul.f32 %v1347_v31, %v765_v22  ;;  %vm783_vm2 = vweird.f32 %v1347_v31 }
 0x7ec   :  { %vm784_vm4 = vmor %vm782_vm3, %vm783_vm2 }
 0x7ed   :  { %v778_v35 = vmul.f32 %v1347_v31, %v777_v34  ;;  %v775_v36 = vsel %vm774_vm1, %v1345_v21, %v771_v33  ;;  %1041 = vmatpush.bf16.msrb.mxu0 %v1267_v53 }
 0x7ee   :  { %v786_v41 = vmul.f32 %v775_v36, %v1689_v45  ;;  %v1260_v45 = vld [vmem:[%s1832_s10 + $0x18] sm:$0xff] }
 0x7ef   :  { %v779_v37 = vmul.f32 0.5, %v778_v35  ;;  %1026 = vmatpush.bf16.msra.mxu3 %v1260_v45 }
 0x7f0   :  { %v791_v0 = vmul.f32 %v1303_v39, %v786_v41 }
 0x7f1   :  { %v780_v32 = vsub.f32 1.5, %v779_v37  ;;  %1042 = vmatpush.bf16.msrb.mxu0 %v1266_v55 }
 0x7f2   :  { %v796_v2 = vadd.f32 %v1304_v38, %v791_v0 }
 0x7f3   :  { %v781_v43 = vmul.f32 %v1347_v31, %v780_v32 }
 0x7f5   :  { %v785_v44 = vsel %vm784_vm4, %v1347_v31, %v781_v43  ;;  %1043 = vmatpush.bf16.msrb.mxu0 %v1265_v40 }
 0x7f6   :  { %v787_v46 = vmul.f32 %v785_v44, %v1696_v48  ;;  %v1259_v48 = vld [vmem:[%s1832_s10 + $0x10] sm:$0xff] }
 0x7f7   :  { %1027 = vmatpush.bf16.msra.mxu3 %v1259_v48 }
 0x7f8   :  { %v792_v47 = vmul.f32 %v1303_v39, %v787_v46 }
 0x7fa   :  { %v797_v49 = vadd.f32 %v1304_v38, %v792_v47 }
 0x7fb   :  { %1028 = vmatpush.bf16.msra.mxu3 %v1258_v24 }
 0x7fc   :  { %v806_v50 = vpack.c.bf16 %v797_v49, %v796_v2 }
 0x7fe   :  { %1171 = vmatmul.msk.bf16.vlgmr.msrb.gmra.mxu1 %vm47_vm0, %v806_v50  ;;  %1172 = vmatmul.msk.bf16.vlgmr.msrb.gmra.mxu2 %vm47_vm0, %v806_v50 }
 0x7ff   :  { %1029 = vmatpush.bf16.msra.mxu3 %v1257_v54 }
 0x87b   :  { %v865_v57 = vpop.f32.mrf.mxu1 }
 0x87c   :  { %v866_v27 = vadd.f32 %v865_v57, %v809_v58 }
 0x87e   :  { %v884_v63 = vmax.f32 %v866_v27, 0.0 }
 0x881   :  { %v879_v59 = vpop.f32.mrf.mxu2 }
 0x882   :  { %v880_v3 = vadd.f32 %v879_v59, %v810_v61 }
 0x883   :  { %v867_v60 = vpop.f32.mrf.mxu1 }
 0x884   :  { %v868_v62 = vadd.f32 %v867_v60, %v809_v58  ;;  %v885_v7 = vmax.f32 %v880_v3, 0.0 }
 0x886   :  { %v886_v1 = vmax.f32 %v868_v62, 0.0 }
 0x888   :  { %v920_v4 = vpack.c.bf16 %v886_v1, %v884_v63 }
 0x889   :  { %v881_v5 = vpop.f32.mrf.mxu2 }
 0x88a   :  { %v882_v6 = vadd.f32 %v881_v5, %v810_v61  ;;  %1030 = vmatmul.bf16.vlgmr.msra.gmra.mxu3 %v920_v4 }
 0x88c   :  { %v887_v8 = vmax.f32 %v882_v6, 0.0 }
 0x88e   :  { %v921_v9 = vpack.c.bf16 %v887_v8, %v885_v7 }
 0x890   :  { %1044 = vmatmul.bf16.vlgmr.msrb.gmra.mxu0 %v921_v9 }
 0x90d   :  { %v1031_v12 = vpop.f32.mrf.mxu3  ;;  %v1045_v13 = vpop.f32.mrf.mxu0 }
 0x90e   :  { %v1032_v15 = vadd.f32 %v1305_v11, %v1031_v12 }
 0x910   :  { %v1046_v16 = vadd.f32 %v1045_v13, %v1032_v15 }
 0x912   :  { %v1050_v17 = vadd.f32 %v1046_v16, %v1678_v14 }
 0x914   :  { %1052 = vst.msk [vmem:[#allocation2] sm:$0xff] %vm47_vm0, %v1050_v17 }
 0x915   :  { %v1033_v18 = vpop.f32.mrf.mxu3  ;;  %v1047_v20 = vpop.f32.mrf.mxu0 }
 0x916   :  { %v1034_v19 = vadd.f32 %v1305_v11, %v1033_v18 }
 0x918   :  { %v1048_v21 = vadd.f32 %v1047_v20, %v1034_v19 }
 0x91a   :  { %v1051_v22 = vadd.f32 %v1048_v21, %v1683_v42 }
 0x91c   :  { %1053 = vst.msk [vmem:[#allocation2 + $0x8] sm:$0xff] %vm47_vm0, %v1051_v22 }
 0x91d   :  { %1066 = dma.vmem_to_hbm [thread:$0]  %s1059_s13, 256, %s1061_s4, [#allocation3], %s1384_s11, %s1384_s11, %s1385_s16  }
 0x91e   :  { %1372 = dma.done.wait [#allocation3], 256  }
 0x91f   :  { %1373 = vsyncadd [#allocation3], 4294967040 }
 0x920   :  { %1071 = vsyncpa [#allocation3], 1 }

</bundles_post_ra>
